<compile_context>
chip_gen: v7x
topology: tpu7x:2x2x1
jax: 0.10.0
libtpu: 0.0.40
codegen_flags: <defaults>
</compile_context>

<pallas_src>
import jax
import jax.numpy as jnp
from jax.experimental import pallas as pl
from jax.experimental.pallas import tpu as pltpu


def _round_up(x, m):
    return ((x + m - 1) // m) * m


# -----------------------------------------------------------------------------
# Fused LILSTM kernel: stacked LSTM layers + decoder in one pallas_call.
# -----------------------------------------------------------------------------
def _make_lilstm_kernel(num_layers, seq_len, batch, hidden):
    T, B, H = seq_len, batch, hidden

    def kernel(*refs):
        # ---- unpack refs (inputs..., outputs..., scratch) --------------------
        idx = 0
        emb_ref = refs[idx]; idx += 1                          # (T*B, D_in)
        layer_refs = []
        for _ in range(num_layers):                            # wi_t, wh_t, b, h0, c0
            layer_refs.append(refs[idx:idx + 5]); idx += 5
        decw_ref, decb_ref = refs[idx], refs[idx + 1]; idx += 2
        dec_ref = refs[idx]; idx += 1                          # (T*B, Vp)
        state_refs = []
        for _ in range(num_layers):                            # hT, cT
            state_refs.append((refs[idx], refs[idx + 1])); idx += 2
        seq_sc = refs[idx]                                     # VMEM (T*B, H)

        # ---- stacked LSTM layers (fused, time loop fully unrolled) -----------
        x_flat = emb_ref[...]                                  # (T*B, D_in)
        for l in range(num_layers):
            wi_ref, wh_ref, b_ref, h0_ref, c0_ref = layer_refs[l]
            # Input projection for ALL timesteps in one MXU pass; bias folded in.
            xg = (jnp.dot(x_flat, wi_ref[...],
                          preferred_element_type=jnp.float32)
                  + b_ref[...])                                # (T*B, 4H)
            wh = wh_ref[...]                                   # (H, 4H) resident
            h = h0_ref[...]                                    # (B, H) in vregs
            c = c0_ref[...]
            for t in range(T):                                 # unrolled recurrence
                gates = xg[t * B:(t + 1) * B, :] + jnp.dot(
                    h, wh, preferred_element_type=jnp.float32)  # (B, 4H)
                i_g = jax.nn.sigmoid(gates[:, 0 * H:1 * H])
                f_g = jax.nn.sigmoid(gates[:, 1 * H:2 * H])
                g_g = jnp.tanh(gates[:, 2 * H:3 * H])
                o_g = jax.nn.sigmoid(gates[:, 3 * H:4 * H])
                c = f_g * c + i_g * g_g
                h = o_g * jnp.tanh(c)
                seq_sc[t * B:(t + 1) * B, :] = h               # collect layer output
            hT_ref, cT_ref = state_refs[l]
            hT_ref[...] = h                                    # written once per layer
            cT_ref[...] = c
            x_flat = seq_sc[...]                               # next layer's input

        # ---- decoder: one lane-dense (T*B, Vp) matmul -------------------------
        dec_ref[...] = (jnp.dot(x_flat, decw_ref[...],
                                preferred_element_type=jnp.float32)
                        + decb_ref[...])

    return kernel


def _lilstm_fused_call(emb_flat, rnn_params, h0s, c0s, dec_w_t_pad, dec_b_pad):
    TB = emb_flat.shape[0]
    B, H = h0s[0].shape
    T = TB // B
    L = len(rnn_params)
    Vp = dec_w_t_pad.shape[-1]

    args = [emb_flat]
    for l in range(L):
        args += [rnn_params[l]["wi_t"], rnn_params[l]["wh_t"],
                 rnn_params[l]["b2d"], h0s[l], c0s[l]]
    args += [dec_w_t_pad, dec_b_pad]

    vmem = pl.BlockSpec(memory_space=pltpu.MemorySpace.VMEM)
    out_shape = (jax.ShapeDtypeStruct((TB, Vp), jnp.float32),) + tuple(
        jax.ShapeDtypeStruct((B, H), jnp.float32) for _ in range(2 * L))

    return pl.pallas_call(
        _make_lilstm_kernel(L, T, B, H),
        out_shape=out_shape,
        in_specs=[vmem] * len(args),
        out_specs=tuple(vmem for _ in out_shape),
        scratch_shapes=[pltpu.VMEM((TB, H), jnp.float32)],
    )(*args)


# -----------------------------------------------------------------------------
# Parameter / hidden-state construction (matches LILSTM init semantics).
# -----------------------------------------------------------------------------
def init_params(key, token_size, input_size, hidden_size, num_layers):
    init_range = 0.1
    keys = jax.random.split(key, 2 + num_layers)
    params = {}
    # encoder.weight ~ U(-0.1, 0.1), shape (V, D_in)
    params["encoder_weight"] = jax.random.uniform(
        keys[0], (token_size, input_size), jnp.float32, -init_range, init_range)

    # decoder.weight ~ U(-0.1, 0.1) shape (V, H); bias zeros.
    # Stored pre-transposed and lane-padded to a multiple of 128 so the kernel's
    # decoder store is unmasked; padding sliced off in the wrapper.
    v_pad = _round_up(token_size, 128)
    dec_w = jax.random.uniform(keys[1], (token_size, hidden_size), jnp.float32,
                               -init_range, init_range)
    params["dec_w_t_pad"] = (jnp.zeros((hidden_size, v_pad), jnp.float32)
                             .at[:, :token_size].set(dec_w.T))
    params["dec_b_pad"] = jnp.zeros((1, v_pad), jnp.float32)

    params["rnns"] = []
    for l in range(num_layers):
        d_in = input_size if l == 0 else hidden_size
        k = 1.0 / float(hidden_size) ** 0.5
        ki, kh, kbi, kbh = jax.random.split(keys[2 + l], 4)
        bi = jax.random.uniform(kbi, (4 * hidden_size,), jnp.float32, -k, k)
        bh = jax.random.uniform(kbh, (4 * hidden_size,), jnp.float32, -k, k)
        layer = {
            # PyTorch Linear stores (4H, D); we keep the transposed layout.
            "wi_t": jax.random.uniform(ki, (d_in, 4 * hidden_size),
                                       jnp.float32, -k, k),
            "wh_t": jax.random.uniform(kh, (hidden_size, 4 * hidden_size),
                                       jnp.float32, -k, k),
            # i2h.bias + h2h.bias always add -> combine once at init.
            "b2d": (bi + bh).reshape(1, 4 * hidden_size),
        }
        params["rnns"].append(layer)
    return params


def init_hidden(batch, hidden_size, num_layers):
    return [(jnp.zeros((1, batch, hidden_size), jnp.float32),
             jnp.zeros((1, batch, hidden_size), jnp.float32))
            for _ in range(num_layers)]


# -----------------------------------------------------------------------------
# LILSTM forward
# -----------------------------------------------------------------------------
@jax.jit
def lilstm_forward(params, inputs, hx):
    """inputs: (T, B) int32 tokens; hx: list of (h, c), each (1, B, H)."""
    T, B = inputs.shape
    V = params["encoder_weight"].shape[0]
    # Encoder: embedding lookup (gather) in plain JAX glue.
    emb = jnp.take(params["encoder_weight"], inputs, axis=0)   # (T, B, D_in)
    emb_flat = emb.reshape(T * B, emb.shape[-1])

    h0s = [h[0] for (h, _) in hx]
    c0s = [c[0] for (_, c) in hx]
    outs = _lilstm_fused_call(emb_flat, params["rnns"], h0s, c0s,
                              params["dec_w_t_pad"], params["dec_b_pad"])
    decoded = outs[0][:, :V]                                   # drop lane padding
    new_hidden = [(outs[1 + 2 * l][None, ...], outs[2 + 2 * l][None, ...])
                  for l in range(len(params["rnns"]))]
    return decoded, new_hidden


# -----------------------------------------------------------------------------
# Pure-JAX reference (same math, no Pallas) for a correctness cross-check.
# -----------------------------------------------------------------------------
def _reference_forward(params, inputs, hx):
    hp = jax.lax.Precision.HIGHEST
    T, B = inputs.shape
    V = params["encoder_weight"].shape[0]
    x = jnp.take(params["encoder_weight"], inputs, axis=0)     # (T, B, D_in)
    new_hidden = []
    for l, layer in enumerate(params["rnns"]):
        h, c = hx[l][0][0], hx[l][1][0]
        H = h.shape[-1]
        outs = []
        for t in range(T):
            gates = (jnp.dot(x[t], layer["wi_t"], precision=hp)
                     + jnp.dot(h, layer["wh_t"], precision=hp)
                     + layer["b2d"][0])
            i = jax.nn.sigmoid(gates[:, 0:H])
            f = jax.nn.sigmoid(gates[:, H:2 * H])
            g = jnp.tanh(gates[:, 2 * H:3 * H])
            o = jax.nn.sigmoid(gates[:, 3 * H:4 * H])
            c = f * c + i * g
            h = o * jnp.tanh(c)
            outs.append(h)
        new_hidden.append((h[None], c[None]))
        x = jnp.stack(outs, axis=0)
    flat = x.reshape(T * B, x.shape[-1])
    decoded = (jnp.dot(flat, params["dec_w_t_pad"][:, :V], precision=hp)
               + params["dec_b_pad"][0, :V])
    return decoded, new_hidden


if __name__ == "__main__":
    token_size, input_size, hidden_size, num_layers = 50, 32, 32, 2
    seq_len, batch = 8, 2

    key = jax.random.PRNGKey(0)
    k_params, k_tokens = jax.random.split(key)
    params = init_params(k_params, token_size, input_size, hidden_size, num_layers)
    tokens = jax.random.randint(k_tokens, (seq_len, batch), 0, token_size,
                                dtype=jnp.int32)
    hx = init_hidden(batch, hidden_size, num_layers)

    decoded, hidden = lilstm_forward(params, tokens, hx)
    jax.block_until_ready(decoded)
    for h, c in hidden:
        jax.block_until_ready(h)
        jax.block_until_ready(c)

    assert decoded.shape == (seq_len * batch, token_size)
    assert all(h.shape == (1, batch, hidden_size) and
               c.shape == (1, batch, hidden_size) for h, c in hidden)

    # Cross-check the fused Pallas kernel against a pure-JAX reference.
    ref_decoded, ref_hidden = _reference_forward(params, tokens, hx)
    assert jnp.allclose(decoded, ref_decoded, atol=5e-3, rtol=5e-3)
    for (h, c), (rh, rc) in zip(hidden, ref_hidden):
        assert jnp.allclose(h, rh, atol=5e-3, rtol=5e-3)
        assert jnp.allclose(c, rc, atol=5e-3, rtol=5e-3)

    print("KERNEL_OK")
</pallas_src>

<mosaic_0001>
module attributes {stable_mosaic.version = 11 : i64} {
  func.func @kernel(%arg0: memref<16x32xf32, #tpu.memory_space<vmem>>, %arg1: memref<32x128xf32, #tpu.memory_space<vmem>>, %arg2: memref<32x128xf32, #tpu.memory_space<vmem>>, %arg3: memref<1x128xf32, #tpu.memory_space<vmem>>, %arg4: memref<2x32xf32, #tpu.memory_space<vmem>>, %arg5: memref<2x32xf32, #tpu.memory_space<vmem>>, %arg6: memref<32x128xf32, #tpu.memory_space<vmem>>, %arg7: memref<32x128xf32, #tpu.memory_space<vmem>>, %arg8: memref<1x128xf32, #tpu.memory_space<vmem>>, %arg9: memref<2x32xf32, #tpu.memory_space<vmem>>, %arg10: memref<2x32xf32, #tpu.memory_space<vmem>>, %arg11: memref<32x128xf32, #tpu.memory_space<vmem>>, %arg12: memref<1x128xf32, #tpu.memory_space<vmem>>, %arg13: memref<16x128xf32, #tpu.memory_space<vmem>>, %arg14: memref<2x32xf32, #tpu.memory_space<vmem>>, %arg15: memref<2x32xf32, #tpu.memory_space<vmem>>, %arg16: memref<2x32xf32, #tpu.memory_space<vmem>>, %arg17: memref<2x32xf32, #tpu.memory_space<vmem>>, %arg18: memref<16x32xf32, #tpu.memory_space<vmem>>) attributes {dimension_semantics = [], scalar_prefetch = 0 : i64, scratch_operands = 1 : i64, tpu.core_type = #tpu.core_type<tc>} {
    %c0 = arith.constant 0 : index
    %c0_0 = arith.constant 0 : index
    %0 = vector.load %arg0[%c0, %c0_0] : memref<16x32xf32, #tpu.memory_space<vmem>>, vector<16x32xf32>
    %c0_1 = arith.constant 0 : index
    %c0_2 = arith.constant 0 : index
    %1 = vector.load %arg1[%c0_1, %c0_2] : memref<32x128xf32, #tpu.memory_space<vmem>>, vector<32x128xf32>
    %cst = arith.constant dense<0.000000e+00> : vector<16x128xf32>
    %2 = tpu.matmul %0, %1, %cst {dimension_numbers = #tpu.dot_dimension_numbers<[1], [0], [0], [1], [0, 0, 1, 1], [], []>} : vector<16x32xf32>, vector<32x128xf32>, vector<16x128xf32> -> vector<16x128xf32>
    %c0_3 = arith.constant 0 : index
    %c0_4 = arith.constant 0 : index
    %3 = vector.load %arg3[%c0_3, %c0_4] : memref<1x128xf32, #tpu.memory_space<vmem>>, vector<1x128xf32>
    %4 = vector.broadcast %3 : vector<1x128xf32> to vector<16x128xf32>
    %5 = arith.addf %2, %4 : vector<16x128xf32>
    %c0_5 = arith.constant 0 : index
    %c0_6 = arith.constant 0 : index
    %6 = vector.load %arg2[%c0_5, %c0_6] : memref<32x128xf32, #tpu.memory_space<vmem>>, vector<32x128xf32>
    %c0_7 = arith.constant 0 : index
    %c0_8 = arith.constant 0 : index
    %7 = vector.load %arg4[%c0_7, %c0_8] : memref<2x32xf32, #tpu.memory_space<vmem>>, vector<2x32xf32>
    %c0_9 = arith.constant 0 : index
    %c0_10 = arith.constant 0 : index
    %8 = vector.load %arg5[%c0_9, %c0_10] : memref<2x32xf32, #tpu.memory_space<vmem>>, vector<2x32xf32>
    %9 = vector.extract_strided_slice %5 {offsets = [0, 0], sizes = [2, 128], strides = [1, 1]} : vector<16x128xf32> to vector<2x128xf32>
    %cst_11 = arith.constant dense<0.000000e+00> : vector<2x128xf32>
    %10 = tpu.matmul %7, %6, %cst_11 {dimension_numbers = #tpu.dot_dimension_numbers<[1], [0], [0], [1], [0, 0, 1, 1], [], []>} : vector<2x32xf32>, vector<32x128xf32>, vector<2x128xf32> -> vector<2x128xf32>
    %11 = arith.addf %9, %10 : vector<2x128xf32>
    %12 = vector.extract_strided_slice %11 {offsets = [0, 0], sizes = [2, 32], strides = [1, 1]} : vector<2x128xf32> to vector<2x32xf32>
    %13 = arith.negf %12 : vector<2x32xf32>
    %14 = math.exp %13 : vector<2x32xf32>
    %cst_12 = arith.constant 1.000000e+00 : f32
    %15 = vector.broadcast %cst_12 : f32 to vector<2x32xf32>
    %16 = arith.addf %15, %14 : vector<2x32xf32>
    %17 = arith.divf %15, %16 : vector<2x32xf32>
    %18 = vector.extract_strided_slice %11 {offsets = [0, 32], sizes = [2, 32], strides = [1, 1]} : vector<2x128xf32> to vector<2x32xf32>
    %19 = arith.negf %18 : vector<2x32xf32>
    %20 = math.exp %19 : vector<2x32xf32>
    %cst_13 = arith.constant 1.000000e+00 : f32
    %21 = vector.broadcast %cst_13 : f32 to vector<2x32xf32>
    %22 = arith.addf %21, %20 : vector<2x32xf32>
    %23 = arith.divf %21, %22 : vector<2x32xf32>
    %24 = vector.extract_strided_slice %11 {offsets = [0, 64], sizes = [2, 32], strides = [1, 1]} : vector<2x128xf32> to vector<2x32xf32>
    %25 = math.tanh %24 : vector<2x32xf32>
    %26 = vector.extract_strided_slice %11 {offsets = [0, 96], sizes = [2, 32], strides = [1, 1]} : vector<2x128xf32> to vector<2x32xf32>
    %27 = arith.negf %26 : vector<2x32xf32>
    %28 = math.exp %27 : vector<2x32xf32>
    %cst_14 = arith.constant 1.000000e+00 : f32
    %29 = vector.broadcast %cst_14 : f32 to vector<2x32xf32>
    %30 = arith.addf %29, %28 : vector<2x32xf32>
    %31 = arith.divf %29, %30 : vector<2x32xf32>
    %32 = arith.mulf %23, %8 : vector<2x32xf32>
    %33 = arith.mulf %17, %25 : vector<2x32xf32>
    %34 = arith.addf %32, %33 : vector<2x32xf32>
    %35 = math.tanh %34 : vector<2x32xf32>
    %36 = arith.mulf %31, %35 : vector<2x32xf32>
    %c0_15 = arith.constant 0 : index
    %c0_16 = arith.constant 0 : index
    %37 = vector.load %arg18[%c0_15, %c0_16] : memref<16x32xf32, #tpu.memory_space<vmem>>, vector<2x32xf32>
    tpu.vector_store %arg18[%c0_15, %c0_16], %36 {strides = array<i32>} : memref<16x32xf32, #tpu.memory_space<vmem>>, vector<2x32xf32>,
    %38 = vector.extract_strided_slice %5 {offsets = [2, 0], sizes = [2, 128], strides = [1, 1]} : vector<16x128xf32> to vector<2x128xf32>
    %cst_17 = arith.constant dense<0.000000e+00> : vector<2x128xf32>
    %39 = tpu.matmul %36, %6, %cst_17 {dimension_numbers = #tpu.dot_dimension_numbers<[1], [0], [0], [1], [0, 0, 1, 1], [], []>} : vector<2x32xf32>, vector<32x128xf32>, vector<2x128xf32> -> vector<2x128xf32>
    %40 = arith.addf %38, %39 : vector<2x128xf32>
    %41 = vector.extract_strided_slice %40 {offsets = [0, 0], sizes = [2, 32], strides = [1, 1]} : vector<2x128xf32> to vector<2x32xf32>
    %42 = arith.negf %41 : vector<2x32xf32>
    %43 = math.exp %42 : vector<2x32xf32>
    %cst_18 = arith.constant 1.000000e+00 : f32
    %44 = vector.broadcast %cst_18 : f32 to vector<2x32xf32>
    %45 = arith.addf %44, %43 : vector<2x32xf32>
    %46 = arith.divf %44, %45 : vector<2x32xf32>
    %47 = vector.extract_strided_slice %40 {offsets = [0, 32], sizes = [2, 32], strides = [1, 1]} : vector<2x128xf32> to vector<2x32xf32>
    %48 = arith.negf %47 : vector<2x32xf32>
    %49 = math.exp %48 : vector<2x32xf32>
    %cst_19 = arith.constant 1.000000e+00 : f32
    %50 = vector.broadcast %cst_19 : f32 to vector<2x32xf32>
    %51 = arith.addf %50, %49 : vector<2x32xf32>
    %52 = arith.divf %50, %51 : vector<2x32xf32>
    %53 = vector.extract_strided_slice %40 {offsets = [0, 64], sizes = [2, 32], strides = [1, 1]} : vector<2x128xf32> to vector<2x32xf32>
    %54 = math.tanh %53 : vector<2x32xf32>
    %55 = vector.extract_strided_slice %40 {offsets = [0, 96], sizes = [2, 32], strides = [1, 1]} : vector<2x128xf32> to vector<2x32xf32>
    %56 = arith.negf %55 : vector<2x32xf32>
    %57 = math.exp %56 : vector<2x32xf32>
    %cst_20 = arith.constant 1.000000e+00 : f32
    %58 = vector.broadcast %cst_20 : f32 to vector<2x32xf32>
    %59 = arith.addf %58, %57 : vector<2x32xf32>
    %60 = arith.divf %58, %59 : vector<2x32xf32>
    %61 = arith.mulf %52, %34 : vector<2x32xf32>
    %62 = arith.mulf %46, %54 : vector<2x32xf32>
    %63 = arith.addf %61, %62 : vector<2x32xf32>
    %64 = math.tanh %63 : vector<2x32xf32>
    %65 = arith.mulf %60, %64 : vector<2x32xf32>
    %c2 = arith.constant 2 : index
    %c0_21 = arith.constant 0 : index
    %66 = vector.load %arg18[%c2, %c0_21] : memref<16x32xf32, #tpu.memory_space<vmem>>, vector<2x32xf32>
    tpu.vector_store %arg18[%c2, %c0_21], %65 {strides = array<i32>} : memref<16x32xf32, #tpu.memory_space<vmem>>, vector<2x32xf32>,
    %67 = vector.extract_strided_slice %5 {offsets = [4, 0], sizes = [2, 128], strides = [1, 1]} : vector<16x128xf32> to vector<2x128xf32>
    %cst_22 = arith.constant dense<0.000000e+00> : vector<2x128xf32>
    %68 = tpu.matmul %65, %6, %cst_22 {dimension_numbers = #tpu.dot_dimension_numbers<[1], [0], [0], [1], [0, 0, 1, 1], [], []>} : vector<2x32xf32>, vector<32x128xf32>, vector<2x128xf32> -> vector<2x128xf32>
    %69 = arith.addf %67, %68 : vector<2x128xf32>
    %70 = vector.extract_strided_slice %69 {offsets = [0, 0], sizes = [2, 32], strides = [1, 1]} : vector<2x128xf32> to vector<2x32xf32>
    %71 = arith.negf %70 : vector<2x32xf32>
    %72 = math.exp %71 : vector<2x32xf32>
    %cst_23 = arith.constant 1.000000e+00 : f32
    %73 = vector.broadcast %cst_23 : f32 to vector<2x32xf32>
    %74 = arith.addf %73, %72 : vector<2x32xf32>
    %75 = arith.divf %73, %74 : vector<2x32xf32>
    %76 = vector.extract_strided_slice %69 {offsets = [0, 32], sizes = [2, 32], strides = [1, 1]} : vector<2x128xf32> to vector<2x32xf32>
    %77 = arith.negf %76 : vector<2x32xf32>
    %78 = math.exp %77 : vector<2x32xf32>
    %cst_24 = arith.constant 1.000000e+00 : f32
    %79 = vector.broadcast %cst_24 : f32 to vector<2x32xf32>
    %80 = arith.addf %79, %78 : vector<2x32xf32>
    %81 = arith.divf %79, %80 : vector<2x32xf32>
    %82 = vector.extract_strided_slice %69 {offsets = [0, 64], sizes = [2, 32], strides = [1, 1]} : vector<2x128xf32> to vector<2x32xf32>
    %83 = math.tanh %82 : vector<2x32xf32>
    %84 = vector.extract_strided_slice %69 {offsets = [0, 96], sizes = [2, 32], strides = [1, 1]} : vector<2x128xf32> to vector<2x32xf32>
    %85 = arith.negf %84 : vector<2x32xf32>
    %86 = math.exp %85 : vector<2x32xf32>
    %cst_25 = arith.constant 1.000000e+00 : f32
    %87 = vector.broadcast %cst_25 : f32 to vector<2x32xf32>
    %88 = arith.addf %87, %86 : vector<2x32xf32>
    %89 = arith.divf %87, %88 : vector<2x32xf32>
    %90 = arith.mulf %81, %63 : vector<2x32xf32>
    %91 = arith.mulf %75, %83 : vector<2x32xf32>
    %92 = arith.addf %90, %91 : vector<2x32xf32>
    %93 = math.tanh %92 : vector<2x32xf32>
    %94 = arith.mulf %89, %93 : vector<2x32xf32>
    %c4 = arith.constant 4 : index
    %c0_26 = arith.constant 0 : index
    %95 = vector.load %arg18[%c4, %c0_26] : memref<16x32xf32, #tpu.memory_space<vmem>>, vector<2x32xf32>
    tpu.vector_store %arg18[%c4, %c0_26], %94 {strides = array<i32>} : memref<16x32xf32, #tpu.memory_space<vmem>>, vector<2x32xf32>,
    %96 = vector.extract_strided_slice %5 {offsets = [6, 0], sizes = [2, 128], strides = [1, 1]} : vector<16x128xf32> to vector<2x128xf32>
    %cst_27 = arith.constant dense<0.000000e+00> : vector<2x128xf32>
    %97 = tpu.matmul %94, %6, %cst_27 {dimension_numbers = #tpu.dot_dimension_numbers<[1], [0], [0], [1], [0, 0, 1, 1], [], []>} : vector<2x32xf32>, vector<32x128xf32>, vector<2x128xf32> -> vector<2x128xf32>
    %98 = arith.addf %96, %97 : vector<2x128xf32>
    %99 = vector.extract_strided_slice %98 {offsets = [0, 0], sizes = [2, 32], strides = [1, 1]} : vector<2x128xf32> to vector<2x32xf32>
    %100 = arith.negf %99 : vector<2x32xf32>
    %101 = math.exp %100 : vector<2x32xf32>
    %cst_28 = arith.constant 1.000000e+00 : f32
    %102 = vector.broadcast %cst_28 : f32 to vector<2x32xf32>
    %103 = arith.addf %102, %101 : vector<2x32xf32>
    %104 = arith.divf %102, %103 : vector<2x32xf32>
    %105 = vector.extract_strided_slice %98 {offsets = [0, 32], sizes = [2, 32], strides = [1, 1]} : vector<2x128xf32> to vector<2x32xf32>
    %106 = arith.negf %105 : vector<2x32xf32>
    %107 = math.exp %106 : vector<2x32xf32>
    %cst_29 = arith.constant 1.000000e+00 : f32
    %108 = vector.broadcast %cst_29 : f32 to vector<2x32xf32>
    %109 = arith.addf %108, %107 : vector<2x32xf32>
    %110 = arith.divf %108, %109 : vector<2x32xf32>
    %111 = vector.extract_strided_slice %98 {offsets = [0, 64], sizes = [2, 32], strides = [1, 1]} : vector<2x128xf32> to vector<2x32xf32>
    %112 = math.tanh %111 : vector<2x32xf32>
    %113 = vector.extract_strided_slice %98 {offsets = [0, 96], sizes = [2, 32], strides = [1, 1]} : vector<2x128xf32> to vector<2x32xf32>
    %114 = arith.negf %113 : vector<2x32xf32>
    %115 = math.exp %114 : vector<2x32xf32>
    %cst_30 = arith.constant 1.000000e+00 : f32
    %116 = vector.broadcast %cst_30 : f32 to vector<2x32xf32>
    %117 = arith.addf %116, %115 : vector<2x32xf32>
    %118 = arith.divf %116, %117 : vector<2x32xf32>
    %119 = arith.mulf %110, %92 : vector<2x32xf32>
    %120 = arith.mulf %104, %112 : vector<2x32xf32>
    %121 = arith.addf %119, %120 : vector<2x32xf32>
    %122 = math.tanh %121 : vector<2x32xf32>
    %123 = arith.mulf %118, %122 : vector<2x32xf32>
    %c6 = arith.constant 6 : index
    %c0_31 = arith.constant 0 : index
    %124 = vector.load %arg18[%c6, %c0_31] : memref<16x32xf32, #tpu.memory_space<vmem>>, vector<2x32xf32>
    tpu.vector_store %arg18[%c6, %c0_31], %123 {strides = array<i32>} : memref<16x32xf32, #tpu.memory_space<vmem>>, vector<2x32xf32>,
    %125 = vector.extract_strided_slice %5 {offsets = [8, 0], sizes = [2, 128], strides = [1, 1]} : vector<16x128xf32> to vector<2x128xf32>
    %cst_32 = arith.constant dense<0.000000e+00> : vector<2x128xf32>
    %126 = tpu.matmul %123, %6, %cst_32 {dimension_numbers = #tpu.dot_dimension_numbers<[1], [0], [0], [1], [0, 0, 1, 1], [], []>} : vector<2x32xf32>, vector<32x128xf32>, vector<2x128xf32> -> vector<2x128xf32>
    %127 = arith.addf %125, %126 : vector<2x128xf32>
    %128 = vector.extract_strided_slice %127 {offsets = [0, 0], sizes = [2, 32], strides = [1, 1]} : vector<2x128xf32> to vector<2x32xf32>
    %129 = arith.negf %128 : vector<2x32xf32>
    %130 = math.exp %129 : vector<2x32xf32>
    %cst_33 = arith.constant 1.000000e+00 : f32
    %131 = vector.broadcast %cst_33 : f32 to vector<2x32xf32>
    %132 = arith.addf %131, %130 : vector<2x32xf32>
    %133 = arith.divf %131, %132 : vector<2x32xf32>
    %134 = vector.extract_strided_slice %127 {offsets = [0, 32], sizes = [2, 32], strides = [1, 1]} : vector<2x128xf32> to vector<2x32xf32>
    %135 = arith.negf %134 : vector<2x32xf32>
    %136 = math.exp %135 : vector<2x32xf32>
    %cst_34 = arith.constant 1.000000e+00 : f32
    %137 = vector.broadcast %cst_34 : f32 to vector<2x32xf32>
    %138 = arith.addf %137, %136 : vector<2x32xf32>
    %139 = arith.divf %137, %138 : vector<2x32xf32>
    %140 = vector.extract_strided_slice %127 {offsets = [0, 64], sizes = [2, 32], strides = [1, 1]} : vector<2x128xf32> to vector<2x32xf32>
    %141 = math.tanh %140 : vector<2x32xf32>
    %142 = vector.extract_strided_slice %127 {offsets = [0, 96], sizes = [2, 32], strides = [1, 1]} : vector<2x128xf32> to vector<2x32xf32>
    %143 = arith.negf %142 : vector<2x32xf32>
    %144 = math.exp %143 : vector<2x32xf32>
    %cst_35 = arith.constant 1.000000e+00 : f32
    %145 = vector.broadcast %cst_35 : f32 to vector<2x32xf32>
    %146 = arith.addf %145, %144 : vector<2x32xf32>
    %147 = arith.divf %145, %146 : vector<2x32xf32>
    %148 = arith.mulf %139, %121 : vector<2x32xf32>
    %149 = arith.mulf %133, %141 : vector<2x32xf32>
    %150 = arith.addf %148, %149 : vector<2x32xf32>
    %151 = math.tanh %150 : vector<2x32xf32>
    %152 = arith.mulf %147, %151 : vector<2x32xf32>
    %c8 = arith.constant 8 : index
    %c0_36 = arith.constant 0 : index
    %153 = vector.load %arg18[%c8, %c0_36] : memref<16x32xf32, #tpu.memory_space<vmem>>, vector<2x32xf32>
    tpu.vector_store %arg18[%c8, %c0_36], %152 {strides = array<i32>} : memref<16x32xf32, #tpu.memory_space<vmem>>, vector<2x32xf32>,
    %154 = vector.extract_strided_slice %5 {offsets = [10, 0], sizes = [2, 128], strides = [1, 1]} : vector<16x128xf32> to vector<2x128xf32>
    %cst_37 = arith.constant dense<0.000000e+00> : vector<2x128xf32>
    %155 = tpu.matmul %152, %6, %cst_37 {dimension_numbers = #tpu.dot_dimension_numbers<[1], [0], [0], [1], [0, 0, 1, 1], [], []>} : vector<2x32xf32>, vector<32x128xf32>, vector<2x128xf32> -> vector<2x128xf32>
    %156 = arith.addf %154, %155 : vector<2x128xf32>
    %157 = vector.extract_strided_slice %156 {offsets = [0, 0], sizes = [2, 32], strides = [1, 1]} : vector<2x128xf32> to vector<2x32xf32>
    %158 = arith.negf %157 : vector<2x32xf32>
    %159 = math.exp %158 : vector<2x32xf32>
    %cst_38 = arith.constant 1.000000e+00 : f32
    %160 = vector.broadcast %cst_38 : f32 to vector<2x32xf32>
    %161 = arith.addf %160, %159 : vector<2x32xf32>
    %162 = arith.divf %160, %161 : vector<2x32xf32>
    %163 = vector.extract_strided_slice %156 {offsets = [0, 32], sizes = [2, 32], strides = [1, 1]} : vector<2x128xf32> to vector<2x32xf32>
    %164 = arith.negf %163 : vector<2x32xf32>
    %165 = math.exp %164 : vector<2x32xf32>
    %cst_39 = arith.constant 1.000000e+00 : f32
    %166 = vector.broadcast %cst_39 : f32 to vector<2x32xf32>
    %167 = arith.addf %166, %165 : vector<2x32xf32>
    %168 = arith.divf %166, %167 : vector<2x32xf32>
    %169 = vector.extract_strided_slice %156 {offsets = [0, 64], sizes = [2, 32], strides = [1, 1]} : vector<2x128xf32> to vector<2x32xf32>
    %170 = math.tanh %169 : vector<2x32xf32>
    %171 = vector.extract_strided_slice %156 {offsets = [0, 96], sizes = [2, 32], strides = [1, 1]} : vector<2x128xf32> to vector<2x32xf32>
    %172 = arith.negf %171 : vector<2x32xf32>
    %173 = math.exp %172 : vector<2x32xf32>
    %cst_40 = arith.constant 1.000000e+00 : f32
    %174 = vector.broadcast %cst_40 : f32 to vector<2x32xf32>
    %175 = arith.addf %174, %173 : vector<2x32xf32>
    %176 = arith.divf %174, %175 : vector<2x32xf32>
    %177 = arith.mulf %168, %150 : vector<2x32xf32>
    %178 = arith.mulf %162, %170 : vector<2x32xf32>
    %179 = arith.addf %177, %178 : vector<2x32xf32>
    %180 = math.tanh %179 : vector<2x32xf32>
    %181 = arith.mulf %176, %180 : vector<2x32xf32>
    %c10 = arith.constant 10 : index
    %c0_41 = arith.constant 0 : index
    %182 = vector.load %arg18[%c10, %c0_41] : memref<16x32xf32, #tpu.memory_space<vmem>>, vector<2x32xf32>
    tpu.vector_store %arg18[%c10, %c0_41], %181 {strides = array<i32>} : memref<16x32xf32, #tpu.memory_space<vmem>>, vector<2x32xf32>,
    %183 = vector.extract_strided_slice %5 {offsets = [12, 0], sizes = [2, 128], strides = [1, 1]} : vector<16x128xf32> to vector<2x128xf32>
    %cst_42 = arith.constant dense<0.000000e+00> : vector<2x128xf32>
    %184 = tpu.matmul %181, %6, %cst_42 {dimension_numbers = #tpu.dot_dimension_numbers<[1], [0], [0], [1], [0, 0, 1, 1], [], []>} : vector<2x32xf32>, vector<32x128xf32>, vector<2x128xf32> -> vector<2x128xf32>
    %185 = arith.addf %183, %184 : vector<2x128xf32>
    %186 = vector.extract_strided_slice %185 {offsets = [0, 0], sizes = [2, 32], strides = [1, 1]} : vector<2x128xf32> to vector<2x32xf32>
    %187 = arith.negf %186 : vector<2x32xf32>
    %188 = math.exp %187 : vector<2x32xf32>
    %cst_43 = arith.constant 1.000000e+00 : f32
    %189 = vector.broadcast %cst_43 : f32 to vector<2x32xf32>
    %190 = arith.addf %189, %188 : vector<2x32xf32>
    %191 = arith.divf %189, %190 : vector<2x32xf32>
    %192 = vector.extract_strided_slice %185 {offsets = [0, 32], sizes = [2, 32], strides = [1, 1]} : vector<2x128xf32> to vector<2x32xf32>
    %193 = arith.negf %192 : vector<2x32xf32>
    %194 = math.exp %193 : vector<2x32xf32>
    %cst_44 = arith.constant 1.000000e+00 : f32
    %195 = vector.broadcast %cst_44 : f32 to vector<2x32xf32>
    %196 = arith.addf %195, %194 : vector<2x32xf32>
    %197 = arith.divf %195, %196 : vector<2x32xf32>
    %198 = vector.extract_strided_slice %185 {offsets = [0, 64], sizes = [2, 32], strides = [1, 1]} : vector<2x128xf32> to vector<2x32xf32>
    %199 = math.tanh %198 : vector<2x32xf32>
    %200 = vector.extract_strided_slice %185 {offsets = [0, 96], sizes = [2, 32], strides = [1, 1]} : vector<2x128xf32> to vector<2x32xf32>
    %201 = arith.negf %200 : vector<2x32xf32>
    %202 = math.exp %201 : vector<2x32xf32>
    %cst_45 = arith.constant 1.000000e+00 : f32
    %203 = vector.broadcast %cst_45 : f32 to vector<2x32xf32>
    %204 = arith.addf %203, %202 : vector<2x32xf32>
    %205 = arith.divf %203, %204 : vector<2x32xf32>
    %206 = arith.mulf %197, %179 : vector<2x32xf32>
    %207 = arith.mulf %191, %199 : vector<2x32xf32>
    %208 = arith.addf %206, %207 : vector<2x32xf32>
    %209 = math.tanh %208 : vector<2x32xf32>
    %210 = arith.mulf %205, %209 : vector<2x32xf32>
    %c12 = arith.constant 12 : index
    %c0_46 = arith.constant 0 : index
    %211 = vector.load %arg18[%c12, %c0_46] : memref<16x32xf32, #tpu.memory_space<vmem>>, vector<2x32xf32>
    tpu.vector_store %arg18[%c12, %c0_46], %210 {strides = array<i32>} : memref<16x32xf32, #tpu.memory_space<vmem>>, vector<2x32xf32>,
    %212 = vector.extract_strided_slice %5 {offsets = [14, 0], sizes = [2, 128], strides = [1, 1]} : vector<16x128xf32> to vector<2x128xf32>
    %cst_47 = arith.constant dense<0.000000e+00> : vector<2x128xf32>
    %213 = tpu.matmul %210, %6, %cst_47 {dimension_numbers = #tpu.dot_dimension_numbers<[1], [0], [0], [1], [0, 0, 1, 1], [], []>} : vector<2x32xf32>, vector<32x128xf32>, vector<2x128xf32> -> vector<2x128xf32>
    %214 = arith.addf %212, %213 : vector<2x128xf32>
    %215 = vector.extract_strided_slice %214 {offsets = [0, 0], sizes = [2, 32], strides = [1, 1]} : vector<2x128xf32> to vector<2x32xf32>
    %216 = arith.negf %215 : vector<2x32xf32>
    %217 = math.exp %216 : vector<2x32xf32>
    %cst_48 = arith.constant 1.000000e+00 : f32
    %218 = vector.broadcast %cst_48 : f32 to vector<2x32xf32>
    %219 = arith.addf %218, %217 : vector<2x32xf32>
    %220 = arith.divf %218, %219 : vector<2x32xf32>
    %221 = vector.extract_strided_slice %214 {offsets = [0, 32], sizes = [2, 32], strides = [1, 1]} : vector<2x128xf32> to vector<2x32xf32>
    %222 = arith.negf %221 : vector<2x32xf32>
    %223 = math.exp %222 : vector<2x32xf32>
    %cst_49 = arith.constant 1.000000e+00 : f32
    %224 = vector.broadcast %cst_49 : f32 to vector<2x32xf32>
    %225 = arith.addf %224, %223 : vector<2x32xf32>
    %226 = arith.divf %224, %225 : vector<2x32xf32>
    %227 = vector.extract_strided_slice %214 {offsets = [0, 64], sizes = [2, 32], strides = [1, 1]} : vector<2x128xf32> to vector<2x32xf32>
    %228 = math.tanh %227 : vector<2x32xf32>
    %229 = vector.extract_strided_slice %214 {offsets = [0, 96], sizes = [2, 32], strides = [1, 1]} : vector<2x128xf32> to vector<2x32xf32>
    %230 = arith.negf %229 : vector<2x32xf32>
    %231 = math.exp %230 : vector<2x32xf32>
    %cst_50 = arith.constant 1.000000e+00 : f32
    %232 = vector.broadcast %cst_50 : f32 to vector<2x32xf32>
    %233 = arith.addf %232, %231 : vector<2x32xf32>
    %234 = arith.divf %232, %233 : vector<2x32xf32>
    %235 = arith.mulf %226, %208 : vector<2x32xf32>
    %236 = arith.mulf %220, %228 : vector<2x32xf32>
    %237 = arith.addf %235, %236 : vector<2x32xf32>
    %238 = math.tanh %237 : vector<2x32xf32>
    %239 = arith.mulf %234, %238 : vector<2x32xf32>
    %c14 = arith.constant 14 : index
    %c0_51 = arith.constant 0 : index
    %240 = vector.load %arg18[%c14, %c0_51] : memref<16x32xf32, #tpu.memory_space<vmem>>, vector<2x32xf32>
    tpu.vector_store %arg18[%c14, %c0_51], %239 {strides = array<i32>} : memref<16x32xf32, #tpu.memory_space<vmem>>, vector<2x32xf32>,
    %c0_52 = arith.constant 0 : index
    %c0_53 = arith.constant 0 : index
    %241 = vector.load %arg14[%c0_52, %c0_53] : memref<2x32xf32, #tpu.memory_space<vmem>>, vector<2x32xf32>
    tpu.vector_store %arg14[%c0_52, %c0_53], %239 {strides = array<i32>} : memref<2x32xf32, #tpu.memory_space<vmem>>, vector<2x32xf32>,
    %c0_54 = arith.constant 0 : index
    %c0_55 = arith.constant 0 : index
    %242 = vector.load %arg15[%c0_54, %c0_55] : memref<2x32xf32, #tpu.memory_space<vmem>>, vector<2x32xf32>
    tpu.vector_store %arg15[%c0_54, %c0_55], %237 {strides = array<i32>} : memref<2x32xf32, #tpu.memory_space<vmem>>, vector<2x32xf32>,
    %c0_56 = arith.constant 0 : index
    %c0_57 = arith.constant 0 : index
    %243 = vector.load %arg18[%c0_56, %c0_57] : memref<16x32xf32, #tpu.memory_space<vmem>>, vector<16x32xf32>
    %c0_58 = arith.constant 0 : index
    %c0_59 = arith.constant 0 : index
    %244 = vector.load %arg6[%c0_58, %c0_59] : memref<32x128xf32, #tpu.memory_space<vmem>>, vector<32x128xf32>
    %cst_60 = arith.constant dense<0.000000e+00> : vector<16x128xf32>
    %245 = tpu.matmul %243, %244, %cst_60 {dimension_numbers = #tpu.dot_dimension_numbers<[1], [0], [0], [1], [0, 0, 1, 1], [], []>} : vector<16x32xf32>, vector<32x128xf32>, vector<16x128xf32> -> vector<16x128xf32>
    %c0_61 = arith.constant 0 : index
    %c0_62 = arith.constant 0 : index
    %246 = vector.load %arg8[%c0_61, %c0_62] : memref<1x128xf32, #tpu.memory_space<vmem>>, vector<1x128xf32>
    %247 = vector.broadcast %246 : vector<1x128xf32> to vector<16x128xf32>
    %248 = arith.addf %245, %247 : vector<16x128xf32>
    %c0_63 = arith.constant 0 : index
    %c0_64 = arith.constant 0 : index
    %249 = vector.load %arg7[%c0_63, %c0_64] : memref<32x128xf32, #tpu.memory_space<vmem>>, vector<32x128xf32>
    %c0_65 = arith.constant 0 : index
    %c0_66 = arith.constant 0 : index
    %250 = vector.load %arg9[%c0_65, %c0_66] : memref<2x32xf32, #tpu.memory_space<vmem>>, vector<2x32xf32>
    %c0_67 = arith.constant 0 : index
    %c0_68 = arith.constant 0 : index
    %251 = vector.load %arg10[%c0_67, %c0_68] : memref<2x32xf32, #tpu.memory_space<vmem>>, vector<2x32xf32>
    %252 = vector.extract_strided_slice %248 {offsets = [0, 0], sizes = [2, 128], strides = [1, 1]} : vector<16x128xf32> to vector<2x128xf32>
    %cst_69 = arith.constant dense<0.000000e+00> : vector<2x128xf32>
    %253 = tpu.matmul %250, %249, %cst_69 {dimension_numbers = #tpu.dot_dimension_numbers<[1], [0], [0], [1], [0, 0, 1, 1], [], []>} : vector<2x32xf32>, vector<32x128xf32>, vector<2x128xf32> -> vector<2x128xf32>
    %254 = arith.addf %252, %253 : vector<2x128xf32>
    %255 = vector.extract_strided_slice %254 {offsets = [0, 0], sizes = [2, 32], strides = [1, 1]} : vector<2x128xf32> to vector<2x32xf32>
    %256 = arith.negf %255 : vector<2x32xf32>
    %257 = math.exp %256 : vector<2x32xf32>
    %cst_70 = arith.constant 1.000000e+00 : f32
    %258 = vector.broadcast %cst_70 : f32 to vector<2x32xf32>
    %259 = arith.addf %258, %257 : vector<2x32xf32>
    %260 = arith.divf %258, %259 : vector<2x32xf32>
    %261 = vector.extract_strided_slice %254 {offsets = [0, 32], sizes = [2, 32], strides = [1, 1]} : vector<2x128xf32> to vector<2x32xf32>
    %262 = arith.negf %261 : vector<2x32xf32>
    %263 = math.exp %262 : vector<2x32xf32>
    %cst_71 = arith.constant 1.000000e+00 : f32
    %264 = vector.broadcast %cst_71 : f32 to vector<2x32xf32>
    %265 = arith.addf %264, %263 : vector<2x32xf32>
    %266 = arith.divf %264, %265 : vector<2x32xf32>
    %267 = vector.extract_strided_slice %254 {offsets = [0, 64], sizes = [2, 32], strides = [1, 1]} : vector<2x128xf32> to vector<2x32xf32>
    %268 = math.tanh %267 : vector<2x32xf32>
    %269 = vector.extract_strided_slice %254 {offsets = [0, 96], sizes = [2, 32], strides = [1, 1]} : vector<2x128xf32> to vector<2x32xf32>
    %270 = arith.negf %269 : vector<2x32xf32>
    %271 = math.exp %270 : vector<2x32xf32>
    %cst_72 = arith.constant 1.000000e+00 : f32
    %272 = vector.broadcast %cst_72 : f32 to vector<2x32xf32>
    %273 = arith.addf %272, %271 : vector<2x32xf32>
    %274 = arith.divf %272, %273 : vector<2x32xf32>
    %275 = arith.mulf %266, %251 : vector<2x32xf32>
    %276 = arith.mulf %260, %268 : vector<2x32xf32>
    %277 = arith.addf %275, %276 : vector<2x32xf32>
    %278 = math.tanh %277 : vector<2x32xf32>
    %279 = arith.mulf %274, %278 : vector<2x32xf32>
    %c0_73 = arith.constant 0 : index
    %c0_74 = arith.constant 0 : index
    %280 = vector.load %arg18[%c0_73, %c0_74] : memref<16x32xf32, #tpu.memory_space<vmem>>, vector<2x32xf32>
    tpu.vector_store %arg18[%c0_73, %c0_74], %279 {strides = array<i32>} : memref<16x32xf32, #tpu.memory_space<vmem>>, vector<2x32xf32>,
    %281 = vector.extract_strided_slice %248 {offsets = [2, 0], sizes = [2, 128], strides = [1, 1]} : vector<16x128xf32> to vector<2x128xf32>
    %cst_75 = arith.constant dense<0.000000e+00> : vector<2x128xf32>
    %282 = tpu.matmul %279, %249, %cst_75 {dimension_numbers = #tpu.dot_dimension_numbers<[1], [0], [0], [1], [0, 0, 1, 1], [], []>} : vector<2x32xf32>, vector<32x128xf32>, vector<2x128xf32> -> vector<2x128xf32>
    %283 = arith.addf %281, %282 : vector<2x128xf32>
    %284 = vector.extract_strided_slice %283 {offsets = [0, 0], sizes = [2, 32], strides = [1, 1]} : vector<2x128xf32> to vector<2x32xf32>
    %285 = arith.negf %284 : vector<2x32xf32>
    %286 = math.exp %285 : vector<2x32xf32>
    %cst_76 = arith.constant 1.000000e+00 : f32
    %287 = vector.broadcast %cst_76 : f32 to vector<2x32xf32>
    %288 = arith.addf %287, %286 : vector<2x32xf32>
    %289 = arith.divf %287, %288 : vector<2x32xf32>
    %290 = vector.extract_strided_slice %283 {offsets = [0, 32], sizes = [2, 32], strides = [1, 1]} : vector<2x128xf32> to vector<2x32xf32>
    %291 = arith.negf %290 : vector<2x32xf32>
    %292 = math.exp %291 : vector<2x32xf32>
    %cst_77 = arith.constant 1.000000e+00 : f32
    %293 = vector.broadcast %cst_77 : f32 to vector<2x32xf32>
    %294 = arith.addf %293, %292 : vector<2x32xf32>
    %295 = arith.divf %293, %294 : vector<2x32xf32>
    %296 = vector.extract_strided_slice %283 {offsets = [0, 64], sizes = [2, 32], strides = [1, 1]} : vector<2x128xf32> to vector<2x32xf32>
    %297 = math.tanh %296 : vector<2x32xf32>
    %298 = vector.extract_strided_slice %283 {offsets = [0, 96], sizes = [2, 32], strides = [1, 1]} : vector<2x128xf32> to vector<2x32xf32>
    %299 = arith.negf %298 : vector<2x32xf32>
    %300 = math.exp %299 : vector<2x32xf32>
    %cst_78 = arith.constant 1.000000e+00 : f32
    %301 = vector.broadcast %cst_78 : f32 to vector<2x32xf32>
    %302 = arith.addf %301, %300 : vector<2x32xf32>
    %303 = arith.divf %301, %302 : vector<2x32xf32>
    %304 = arith.mulf %295, %277 : vector<2x32xf32>
    %305 = arith.mulf %289, %297 : vector<2x32xf32>
    %306 = arith.addf %304, %305 : vector<2x32xf32>
    %307 = math.tanh %306 : vector<2x32xf32>
    %308 = arith.mulf %303, %307 : vector<2x32xf32>
    %c2_79 = arith.constant 2 : index
    %c0_80 = arith.constant 0 : index
    %309 = vector.load %arg18[%c2_79, %c0_80] : memref<16x32xf32, #tpu.memory_space<vmem>>, vector<2x32xf32>
    tpu.vector_store %arg18[%c2_79, %c0_80], %308 {strides = array<i32>} : memref<16x32xf32, #tpu.memory_space<vmem>>, vector<2x32xf32>,
    %310 = vector.extract_strided_slice %248 {offsets = [4, 0], sizes = [2, 128], strides = [1, 1]} : vector<16x128xf32> to vector<2x128xf32>
    %cst_81 = arith.constant dense<0.000000e+00> : vector<2x128xf32>
    %311 = tpu.matmul %308, %249, %cst_81 {dimension_numbers = #tpu.dot_dimension_numbers<[1], [0], [0], [1], [0, 0, 1, 1], [], []>} : vector<2x32xf32>, vector<32x128xf32>, vector<2x128xf32> -> vector<2x128xf32>
    %312 = arith.addf %310, %311 : vector<2x128xf32>
    %313 = vector.extract_strided_slice %312 {offsets = [0, 0], sizes = [2, 32], strides = [1, 1]} : vector<2x128xf32> to vector<2x32xf32>
    %314 = arith.negf %313 : vector<2x32xf32>
    %315 = math.exp %314 : vector<2x32xf32>
    %cst_82 = arith.constant 1.000000e+00 : f32
    %316 = vector.broadcast %cst_82 : f32 to vector<2x32xf32>
    %317 = arith.addf %316, %315 : vector<2x32xf32>
    %318 = arith.divf %316, %317 : vector<2x32xf32>
    %319 = vector.extract_strided_slice %312 {offsets = [0, 32], sizes = [2, 32], strides = [1, 1]} : vector<2x128xf32> to vector<2x32xf32>
    %320 = arith.negf %319 : vector<2x32xf32>
    %321 = math.exp %320 : vector<2x32xf32>
    %cst_83 = arith.constant 1.000000e+00 : f32
    %322 = vector.broadcast %cst_83 : f32 to vector<2x32xf32>
    %323 = arith.addf %322, %321 : vector<2x32xf32>
    %324 = arith.divf %322, %323 : vector<2x32xf32>
    %325 = vector.extract_strided_slice %312 {offsets = [0, 64], sizes = [2, 32], strides = [1, 1]} : vector<2x128xf32> to vector<2x32xf32>
    %326 = math.tanh %325 : vector<2x32xf32>
    %327 = vector.extract_strided_slice %312 {offsets = [0, 96], sizes = [2, 32], strides = [1, 1]} : vector<2x128xf32> to vector<2x32xf32>
    %328 = arith.negf %327 : vector<2x32xf32>
    %329 = math.exp %328 : vector<2x32xf32>
    %cst_84 = arith.constant 1.000000e+00 : f32
    %330 = vector.broadcast %cst_84 : f32 to vector<2x32xf32>
    %331 = arith.addf %330, %329 : vector<2x32xf32>
    %332 = arith.divf %330, %331 : vector<2x32xf32>
    %333 = arith.mulf %324, %306 : vector<2x32xf32>
    %334 = arith.mulf %318, %326 : vector<2x32xf32>
    %335 = arith.addf %333, %334 : vector<2x32xf32>
    %336 = math.tanh %335 : vector<2x32xf32>
    %337 = arith.mulf %332, %336 : vector<2x32xf32>
    %c4_85 = arith.constant 4 : index
    %c0_86 = arith.constant 0 : index
    %338 = vector.load %arg18[%c4_85, %c0_86] : memref<16x32xf32, #tpu.memory_space<vmem>>, vector<2x32xf32>
    tpu.vector_store %arg18[%c4_85, %c0_86], %337 {strides = array<i32>} : memref<16x32xf32, #tpu.memory_space<vmem>>, vector<2x32xf32>,
    %339 = vector.extract_strided_slice %248 {offsets = [6, 0], sizes = [2, 128], strides = [1, 1]} : vector<16x128xf32> to vector<2x128xf32>
    %cst_87 = arith.constant dense<0.000000e+00> : vector<2x128xf32>
    %340 = tpu.matmul %337, %249, %cst_87 {dimension_numbers = #tpu.dot_dimension_numbers<[1], [0], [0], [1], [0, 0, 1, 1], [], []>} : vector<2x32xf32>, vector<32x128xf32>, vector<2x128xf32> -> vector<2x128xf32>
    %341 = arith.addf %339, %340 : vector<2x128xf32>
    %342 = vector.extract_strided_slice %341 {offsets = [0, 0], sizes = [2, 32], strides = [1, 1]} : vector<2x128xf32> to vector<2x32xf32>
    %343 = arith.negf %342 : vector<2x32xf32>
    %344 = math.exp %343 : vector<2x32xf32>
    %cst_88 = arith.constant 1.000000e+00 : f32
    %345 = vector.broadcast %cst_88 : f32 to vector<2x32xf32>
    %346 = arith.addf %345, %344 : vector<2x32xf32>
    %347 = arith.divf %345, %346 : vector<2x32xf32>
    %348 = vector.extract_strided_slice %341 {offsets = [0, 32], sizes = [2, 32], strides = [1, 1]} : vector<2x128xf32> to vector<2x32xf32>
    %349 = arith.negf %348 : vector<2x32xf32>
    %350 = math.exp %349 : vector<2x32xf32>
    %cst_89 = arith.constant 1.000000e+00 : f32
    %351 = vector.broadcast %cst_89 : f32 to vector<2x32xf32>
    %352 = arith.addf %351, %350 : vector<2x32xf32>
    %353 = arith.divf %351, %352 : vector<2x32xf32>
    %354 = vector.extract_strided_slice %341 {offsets = [0, 64], sizes = [2, 32], strides = [1, 1]} : vector<2x128xf32> to vector<2x32xf32>
    %355 = math.tanh %354 : vector<2x32xf32>
    %356 = vector.extract_strided_slice %341 {offsets = [0, 96], sizes = [2, 32], strides = [1, 1]} : vector<2x128xf32> to vector<2x32xf32>
    %357 = arith.negf %356 : vector<2x32xf32>
    %358 = math.exp %357 : vector<2x32xf32>
    %cst_90 = arith.constant 1.000000e+00 : f32
    %359 = vector.broadcast %cst_90 : f32 to vector<2x32xf32>
    %360 = arith.addf %359, %358 : vector<2x32xf32>
    %361 = arith.divf %359, %360 : vector<2x32xf32>
    %362 = arith.mulf %353, %335 : vector<2x32xf32>
    %363 = arith.mulf %347, %355 : vector<2x32xf32>
    %364 = arith.addf %362, %363 : vector<2x32xf32>
    %365 = math.tanh %364 : vector<2x32xf32>
    %366 = arith.mulf %361, %365 : vector<2x32xf32>
    %c6_91 = arith.constant 6 : index
    %c0_92 = arith.constant 0 : index
    %367 = vector.load %arg18[%c6_91, %c0_92] : memref<16x32xf32, #tpu.memory_space<vmem>>, vector<2x32xf32>
    tpu.vector_store %arg18[%c6_91, %c0_92], %366 {strides = array<i32>} : memref<16x32xf32, #tpu.memory_space<vmem>>, vector<2x32xf32>,
    %368 = vector.extract_strided_slice %248 {offsets = [8, 0], sizes = [2, 128], strides = [1, 1]} : vector<16x128xf32> to vector<2x128xf32>
    %cst_93 = arith.constant dense<0.000000e+00> : vector<2x128xf32>
    %369 = tpu.matmul %366, %249, %cst_93 {dimension_numbers = #tpu.dot_dimension_numbers<[1], [0], [0], [1], [0, 0, 1, 1], [], []>} : vector<2x32xf32>, vector<32x128xf32>, vector<2x128xf32> -> vector<2x128xf32>
    %370 = arith.addf %368, %369 : vector<2x128xf32>
    %371 = vector.extract_strided_slice %370 {offsets = [0, 0], sizes = [2, 32], strides = [1, 1]} : vector<2x128xf32> to vector<2x32xf32>
    %372 = arith.negf %371 : vector<2x32xf32>
    %373 = math.exp %372 : vector<2x32xf32>
    %cst_94 = arith.constant 1.000000e+00 : f32
    %374 = vector.broadcast %cst_94 : f32 to vector<2x32xf32>
    %375 = arith.addf %374, %373 : vector<2x32xf32>
    %376 = arith.divf %374, %375 : vector<2x32xf32>
    %377 = vector.extract_strided_slice %370 {offsets = [0, 32], sizes = [2, 32], strides = [1, 1]} : vector<2x128xf32> to vector<2x32xf32>
    %378 = arith.negf %377 : vector<2x32xf32>
    %379 = math.exp %378 : vector<2x32xf32>
    %cst_95 = arith.constant 1.000000e+00 : f32
    %380 = vector.broadcast %cst_95 : f32 to vector<2x32xf32>
    %381 = arith.addf %380, %379 : vector<2x32xf32>
    %382 = arith.divf %380, %381 : vector<2x32xf32>
    %383 = vector.extract_strided_slice %370 {offsets = [0, 64], sizes = [2, 32], strides = [1, 1]} : vector<2x128xf32> to vector<2x32xf32>
    %384 = math.tanh %383 : vector<2x32xf32>
    %385 = vector.extract_strided_slice %370 {offsets = [0, 96], sizes = [2, 32], strides = [1, 1]} : vector<2x128xf32> to vector<2x32xf32>
    %386 = arith.negf %385 : vector<2x32xf32>
    %387 = math.exp %386 : vector<2x32xf32>
    %cst_96 = arith.constant 1.000000e+00 : f32
    %388 = vector.broadcast %cst_96 : f32 to vector<2x32xf32>
    %389 = arith.addf %388, %387 : vector<2x32xf32>
    %390 = arith.divf %388, %389 : vector<2x32xf32>
    %391 = arith.mulf %382, %364 : vector<2x32xf32>
    %392 = arith.mulf %376, %384 : vector<2x32xf32>
    %393 = arith.addf %391, %392 : vector<2x32xf32>
    %394 = math.tanh %393 : vector<2x32xf32>
    %395 = arith.mulf %390, %394 : vector<2x32xf32>
    %c8_97 = arith.constant 8 : index
    %c0_98 = arith.constant 0 : index
    %396 = vector.load %arg18[%c8_97, %c0_98] : memref<16x32xf32, #tpu.memory_space<vmem>>, vector<2x32xf32>
    tpu.vector_store %arg18[%c8_97, %c0_98], %395 {strides = array<i32>} : memref<16x32xf32, #tpu.memory_space<vmem>>, vector<2x32xf32>,
    %397 = vector.extract_strided_slice %248 {offsets = [10, 0], sizes = [2, 128], strides = [1, 1]} : vector<16x128xf32> to vector<2x128xf32>
    %cst_99 = arith.constant dense<0.000000e+00> : vector<2x128xf32>
    %398 = tpu.matmul %395, %249, %cst_99 {dimension_numbers = #tpu.dot_dimension_numbers<[1], [0], [0], [1], [0, 0, 1, 1], [], []>} : vector<2x32xf32>, vector<32x128xf32>, vector<2x128xf32> -> vector<2x128xf32>
    %399 = arith.addf %397, %398 : vector<2x128xf32>
    %400 = vector.extract_strided_slice %399 {offsets = [0, 0], sizes = [2, 32], strides = [1, 1]} : vector<2x128xf32> to vector<2x32xf32>
    %401 = arith.negf %400 : vector<2x32xf32>
    %402 = math.exp %401 : vector<2x32xf32>
    %cst_100 = arith.constant 1.000000e+00 : f32
    %403 = vector.broadcast %cst_100 : f32 to vector<2x32xf32>
    %404 = arith.addf %403, %402 : vector<2x32xf32>
    %405 = arith.divf %403, %404 : vector<2x32xf32>
    %406 = vector.extract_strided_slice %399 {offsets = [0, 32], sizes = [2, 32], strides = [1, 1]} : vector<2x128xf32> to vector<2x32xf32>
    %407 = arith.negf %406 : vector<2x32xf32>
    %408 = math.exp %407 : vector<2x32xf32>
    %cst_101 = arith.constant 1.000000e+00 : f32
    %409 = vector.broadcast %cst_101 : f32 to vector<2x32xf32>
    %410 = arith.addf %409, %408 : vector<2x32xf32>
    %411 = arith.divf %409, %410 : vector<2x32xf32>
    %412 = vector.extract_strided_slice %399 {offsets = [0, 64], sizes = [2, 32], strides = [1, 1]} : vector<2x128xf32> to vector<2x32xf32>
    %413 = math.tanh %412 : vector<2x32xf32>
    %414 = vector.extract_strided_slice %399 {offsets = [0, 96], sizes = [2, 32], strides = [1, 1]} : vector<2x128xf32> to vector<2x32xf32>
    %415 = arith.negf %414 : vector<2x32xf32>
    %416 = math.exp %415 : vector<2x32xf32>
    %cst_102 = arith.constant 1.000000e+00 : f32
    %417 = vector.broadcast %cst_102 : f32 to vector<2x32xf32>
    %418 = arith.addf %417, %416 : vector<2x32xf32>
    %419 = arith.divf %417, %418 : vector<2x32xf32>
    %420 = arith.mulf %411, %393 : vector<2x32xf32>
    %421 = arith.mulf %405, %413 : vector<2x32xf32>
    %422 = arith.addf %420, %421 : vector<2x32xf32>
    %423 = math.tanh %422 : vector<2x32xf32>
    %424 = arith.mulf %419, %423 : vector<2x32xf32>
    %c10_103 = arith.constant 10 : index
    %c0_104 = arith.constant 0 : index
    %425 = vector.load %arg18[%c10_103, %c0_104] : memref<16x32xf32, #tpu.memory_space<vmem>>, vector<2x32xf32>
    tpu.vector_store %arg18[%c10_103, %c0_104], %424 {strides = array<i32>} : memref<16x32xf32, #tpu.memory_space<vmem>>, vector<2x32xf32>,
    %426 = vector.extract_strided_slice %248 {offsets = [12, 0], sizes = [2, 128], strides = [1, 1]} : vector<16x128xf32> to vector<2x128xf32>
    %cst_105 = arith.constant dense<0.000000e+00> : vector<2x128xf32>
    %427 = tpu.matmul %424, %249, %cst_105 {dimension_numbers = #tpu.dot_dimension_numbers<[1], [0], [0], [1], [0, 0, 1, 1], [], []>} : vector<2x32xf32>, vector<32x128xf32>, vector<2x128xf32> -> vector<2x128xf32>
    %428 = arith.addf %426, %427 : vector<2x128xf32>
    %429 = vector.extract_strided_slice %428 {offsets = [0, 0], sizes = [2, 32], strides = [1, 1]} : vector<2x128xf32> to vector<2x32xf32>
    %430 = arith.negf %429 : vector<2x32xf32>
    %431 = math.exp %430 : vector<2x32xf32>
    %cst_106 = arith.constant 1.000000e+00 : f32
    %432 = vector.broadcast %cst_106 : f32 to vector<2x32xf32>
    %433 = arith.addf %432, %431 : vector<2x32xf32>
    %434 = arith.divf %432, %433 : vector<2x32xf32>
    %435 = vector.extract_strided_slice %428 {offsets = [0, 32], sizes = [2, 32], strides = [1, 1]} : vector<2x128xf32> to vector<2x32xf32>
    %436 = arith.negf %435 : vector<2x32xf32>
    %437 = math.exp %436 : vector<2x32xf32>
    %cst_107 = arith.constant 1.000000e+00 : f32
    %438 = vector.broadcast %cst_107 : f32 to vector<2x32xf32>
    %439 = arith.addf %438, %437 : vector<2x32xf32>
    %440 = arith.divf %438, %439 : vector<2x32xf32>
    %441 = vector.extract_strided_slice %428 {offsets = [0, 64], sizes = [2, 32], strides = [1, 1]} : vector<2x128xf32> to vector<2x32xf32>
    %442 = math.tanh %441 : vector<2x32xf32>
    %443 = vector.extract_strided_slice %428 {offsets = [0, 96], sizes = [2, 32], strides = [1, 1]} : vector<2x128xf32> to vector<2x32xf32>
    %444 = arith.negf %443 : vector<2x32xf32>
    %445 = math.exp %444 : vector<2x32xf32>
    %cst_108 = arith.constant 1.000000e+00 : f32
    %446 = vector.broadcast %cst_108 : f32 to vector<2x32xf32>
    %447 = arith.addf %446, %445 : vector<2x32xf32>
    %448 = arith.divf %446, %447 : vector<2x32xf32>
    %449 = arith.mulf %440, %422 : vector<2x32xf32>
    %450 = arith.mulf %434, %442 : vector<2x32xf32>
    %451 = arith.addf %449, %450 : vector<2x32xf32>
    %452 = math.tanh %451 : vector<2x32xf32>
    %453 = arith.mulf %448, %452 : vector<2x32xf32>
    %c12_109 = arith.constant 12 : index
    %c0_110 = arith.constant 0 : index
    %454 = vector.load %arg18[%c12_109, %c0_110] : memref<16x32xf32, #tpu.memory_space<vmem>>, vector<2x32xf32>
    tpu.vector_store %arg18[%c12_109, %c0_110], %453 {strides = array<i32>} : memref<16x32xf32, #tpu.memory_space<vmem>>, vector<2x32xf32>,
    %455 = vector.extract_strided_slice %248 {offsets = [14, 0], sizes = [2, 128], strides = [1, 1]} : vector<16x128xf32> to vector<2x128xf32>
    %cst_111 = arith.constant dense<0.000000e+00> : vector<2x128xf32>
    %456 = tpu.matmul %453, %249, %cst_111 {dimension_numbers = #tpu.dot_dimension_numbers<[1], [0], [0], [1], [0, 0, 1, 1], [], []>} : vector<2x32xf32>, vector<32x128xf32>, vector<2x128xf32> -> vector<2x128xf32>
    %457 = arith.addf %455, %456 : vector<2x128xf32>
    %458 = vector.extract_strided_slice %457 {offsets = [0, 0], sizes = [2, 32], strides = [1, 1]} : vector<2x128xf32> to vector<2x32xf32>
    %459 = arith.negf %458 : vector<2x32xf32>
    %460 = math.exp %459 : vector<2x32xf32>
    %cst_112 = arith.constant 1.000000e+00 : f32
    %461 = vector.broadcast %cst_112 : f32 to vector<2x32xf32>
    %462 = arith.addf %461, %460 : vector<2x32xf32>
    %463 = arith.divf %461, %462 : vector<2x32xf32>
    %464 = vector.extract_strided_slice %457 {offsets = [0, 32], sizes = [2, 32], strides = [1, 1]} : vector<2x128xf32> to vector<2x32xf32>
    %465 = arith.negf %464 : vector<2x32xf32>
    %466 = math.exp %465 : vector<2x32xf32>
    %cst_113 = arith.constant 1.000000e+00 : f32
    %467 = vector.broadcast %cst_113 : f32 to vector<2x32xf32>
    %468 = arith.addf %467, %466 : vector<2x32xf32>
    %469 = arith.divf %467, %468 : vector<2x32xf32>
    %470 = vector.extract_strided_slice %457 {offsets = [0, 64], sizes = [2, 32], strides = [1, 1]} : vector<2x128xf32> to vector<2x32xf32>
    %471 = math.tanh %470 : vector<2x32xf32>
    %472 = vector.extract_strided_slice %457 {offsets = [0, 96], sizes = [2, 32], strides = [1, 1]} : vector<2x128xf32> to vector<2x32xf32>
    %473 = arith.negf %472 : vector<2x32xf32>
    %474 = math.exp %473 : vector<2x32xf32>
    %cst_114 = arith.constant 1.000000e+00 : f32
    %475 = vector.broadcast %cst_114 : f32 to vector<2x32xf32>
    %476 = arith.addf %475, %474 : vector<2x32xf32>
    %477 = arith.divf %475, %476 : vector<2x32xf32>
    %478 = arith.mulf %469, %451 : vector<2x32xf32>
    %479 = arith.mulf %463, %471 : vector<2x32xf32>
    %480 = arith.addf %478, %479 : vector<2x32xf32>
    %481 = math.tanh %480 : vector<2x32xf32>
    %482 = arith.mulf %477, %481 : vector<2x32xf32>
    %c14_115 = arith.constant 14 : index
    %c0_116 = arith.constant 0 : index
    %483 = vector.load %arg18[%c14_115, %c0_116] : memref<16x32xf32, #tpu.memory_space<vmem>>, vector<2x32xf32>
    tpu.vector_store %arg18[%c14_115, %c0_116], %482 {strides = array<i32>} : memref<16x32xf32, #tpu.memory_space<vmem>>, vector<2x32xf32>,
    %c0_117 = arith.constant 0 : index
    %c0_118 = arith.constant 0 : index
    %484 = vector.load %arg16[%c0_117, %c0_118] : memref<2x32xf32, #tpu.memory_space<vmem>>, vector<2x32xf32>
    tpu.vector_store %arg16[%c0_117, %c0_118], %482 {strides = array<i32>} : memref<2x32xf32, #tpu.memory_space<vmem>>, vector<2x32xf32>,
    %c0_119 = arith.constant 0 : index
    %c0_120 = arith.constant 0 : index
    %485 = vector.load %arg17[%c0_119, %c0_120] : memref<2x32xf32, #tpu.memory_space<vmem>>, vector<2x32xf32>
    tpu.vector_store %arg17[%c0_119, %c0_120], %480 {strides = array<i32>} : memref<2x32xf32, #tpu.memory_space<vmem>>, vector<2x32xf32>,
    %c0_121 = arith.constant 0 : index
    %c0_122 = arith.constant 0 : index
    %486 = vector.load %arg18[%c0_121, %c0_122] : memref<16x32xf32, #tpu.memory_space<vmem>>, vector<16x32xf32>
    %c0_123 = arith.constant 0 : index
    %c0_124 = arith.constant 0 : index
    %487 = vector.load %arg11[%c0_123, %c0_124] : memref<32x128xf32, #tpu.memory_space<vmem>>, vector<32x128xf32>
    %cst_125 = arith.constant dense<0.000000e+00> : vector<16x128xf32>
    %488 = tpu.matmul %486, %487, %cst_125 {dimension_numbers = #tpu.dot_dimension_numbers<[1], [0], [0], [1], [0, 0, 1, 1], [], []>} : vector<16x32xf32>, vector<32x128xf32>, vector<16x128xf32> -> vector<16x128xf32>
    %c0_126 = arith.constant 0 : index
    %c0_127 = arith.constant 0 : index
    %489 = vector.load %arg12[%c0_126, %c0_127] : memref<1x128xf32, #tpu.memory_space<vmem>>, vector<1x128xf32>
    %490 = vector.broadcast %489 : vector<1x128xf32> to vector<16x128xf32>
    %491 = arith.addf %488, %490 : vector<16x128xf32>
    %c0_128 = arith.constant 0 : index
    %c0_129 = arith.constant 0 : index
    %492 = vector.load %arg13[%c0_128, %c0_129] : memref<16x128xf32, #tpu.memory_space<vmem>>, vector<16x128xf32>
    tpu.vector_store %arg13[%c0_128, %c0_129], %491 {strides = array<i32>} : memref<16x128xf32, #tpu.memory_space<vmem>>, vector<16x128xf32>,
    return
  }
}

</mosaic_0001>

<bundles_post_ra>
// kernel: lilstm_forward.1
= control target key start
LH: loop header
LB: loop body
LE: loop exit
PB: predicated region body
PF: predicated region fallthrough
CT: control target
= control target key end

     0   :  { %s3444_s0 = inlined_call_operand.vmem [shape: f32[16,32], index: 0, kind: input, shape index: {}]   ;;  %s3445_s1 = inlined_call_operand.vmem [shape: f32[32,128], index: 1, kind: input, shape index: {}]   ;;  %s3446_s2 = inlined_call_operand.vmem [shape: f32[32,128], index: 2, kind: input, shape index: {}]   ;;  %s3447_s3 = inlined_call_operand.vmem [shape: f32[1,128], index: 3, kind: input, shape index: {}]   ;;  %s3448_s4 = inlined_call_operand.vmem [shape: f32[2,32], index: 4, kind: input, shape index: {}]   ;;  %s3449_s5 = inlined_call_operand.vmem [shape: f32[2,32], index: 5, kind: input, shape index: {}]   ;;  %s3450_s6 = inlined_call_operand.vmem [shape: f32[32,128], index: 6, kind: input, shape index: {}]   ;;  %s3451_s7 = inlined_call_operand.vmem [shape: f32[32,128], index: 7, kind: input, shape index: {}]   ;;  %s3452_s8 = inlined_call_operand.vmem [shape: f32[1,128], index: 8, kind: input, shape index: {}]   ;;  %s3453_s9 = inlined_call_operand.vmem [shape: f32[2,32], index: 9, kind: input, shape index: {}]   ;;  %s3454_s10 = inlined_call_operand.vmem [shape: f32[2,32], index: 10, kind: input, shape index: {}]   ;;  %s3455_s11 = inlined_call_operand.vmem [shape: f32[32,128], index: 11, kind: input, shape index: {}]   ;;  %s3456_s12 = inlined_call_operand.vmem [shape: f32[1,128], index: 12, kind: input, shape index: {}]   ;;  %s3457_s13 = inlined_call_operand.hbm [shape: f32[16,128], index: 13, kind: output, shape index: {0}]   ;;  %s3458_s14 = inlined_call_operand.hbm [shape: f32[2,32], index: 14, kind: output, shape index: {1}]   ;;  %s3459_s15 = inlined_call_operand.hbm [shape: f32[2,32], index: 15, kind: output, shape index: {2}]   ;;  %s3460_s16 = inlined_call_operand.hbm [shape: f32[2,32], index: 16, kind: output, shape index: {3}]   ;;  %s3461_s17 = inlined_call_operand.hbm [shape: f32[2,32], index: 17, kind: output, shape index: {4}]  }
   0x1   :  { %3464 = sst [smem:[#allocation14_spill]] %s3444_s0 }
   0x2   :  { %3465 = sst [smem:[#allocation15_spill]] %s3445_s1 }
   0x3   :  { %23 = vsyncpa [#allocation4], 0 }
   0x4   :  { %24 = vsyncpa [#allocation6], 0  ;;  %s3466_s26 = sld [smem:[#allocation15_spill]]  ;;  %v147_v2 = vld [vmem:[%s3446_s2] sm:$0xff]  ;;  %vm65_vm0 = vcmask 261120   ;;  %v2910_v4 = vmov 0.0|0.0  }
   0x5   :  { %2541 = vmatprep.subr.bf16.mxu1 %v2910_v4  ;;  %v148_v5 = vld [vmem:[%s3446_s2 + $0x8] sm:$0xff]  ;;  %s3467_s24 = sld [smem:[#allocation14_spill]]  ;;  %v149_v11 = vld [vmem:[%s3446_s2 + $0x10] sm:$0xff]  ;;  %v150_v12 = vld [vmem:[%s3446_s2 + $0x18] sm:$0xff]  ;;  %vm2911_vm1 = vmmov 0   ;;  %v2912_v13 = vmov 0.0  }
   0x6   :  { %v3032_v8 = vpack.c.bf16 %v148_v5, %v147_v2  ;;  %2343 = vmatprep.mubr.msk.f32.mxu1 %vm2911_vm1, %v2912_v13 }
   0xa   :  { %v54_v0 = vld [vmem:[%s3466_s26] sm:$0xff]  ;;  %v55_v1 = vld [vmem:[%s3466_s26 + $0x8] sm:$0xff]  ;;  %v56_v6 = vld [vmem:[%s3466_s26 + $0x10] sm:$0xff] }
   0xb   :  { %v2533_v3 = vpack.c.bf16 %v55_v1, %v54_v0  ;;  %v57_v7 = vld [vmem:[%s3466_s26 + $0x18] sm:$0xff]  ;;  %v52_v10 = vld [vmem:[%s3467_s24] sm:$0xff] }
   0xc   :  { %v2537_v9 = vpack.c.bf16 %v57_v7, %v56_v6  ;;  %2332 = vmatprep.mubr.msk.f32.mxu0 %vm65_vm0, %v52_v10 }
   0xd   :  { %2534 = vmatprep.subr.bf16.mxu0 %v2533_v3 }
   0xe   :  { %25 = vsyncpa [#allocation9], 0  ;;  %2536 = vmatpush3.bf16.msra.mxu0 %v2533_v3  ;;  %2543 = vmatpush3.bf16.msra.mxu1 %v3032_v8  ;;  %v3047_v14 = vpack.c.bf16 %v150_v12, %v149_v11  ;;  %v53_v15 = vld [vmem:[%s3467_s24 + $0x8] sm:$0xff]  ;;  %v151_v16 = vld [vmem:[%s3448_s4] sm:$0x3]  ;;  %s2913_s19 = smov 64  }
   0xf   :  { %2538 = vmatprep.subr.bf16.mxu0 %v2537_v9  ;;  %2544 = vmatprep.subr.bf16.mxu1 %v2910_v4  ;;  %v2185_v17 = vld [vmem:[%s3447_s3] ss:$0 sm:$0xff]  ;;  %s2914_s3 = smov 32   ;;  %vm259_vm2 = vcmask 254976   ;;  %vm368_vm3 = vcmask 257026   ;;  %vm592_vm4 = vcmask 261126  }
  0x10   :  { %v152_v26 = vld [vmem:[%s3449_s5] sm:$0x3]  ;;  %vm480_vm5 = vcmask 259076   ;;  %s2917_s29 = smov [#allocation8]  }
  0x11   :  { %s2153_s2 = sshll.u32 %s2917_s29, 4  ;;  %s2154_s2 = int_to_ptr.vmem [resolvable:$true] %s2153_s2 }
  0x12   :  { %2540 = vmatpush3.bf16.msra.mxu0 %v2537_v9  ;;  %2546 = vmatpush3.bf16.msra.mxu1 %v3047_v14 }
  0x13   :  { %2547 = vmatprep.subr.bf16.mxu0 %v2910_v4  ;;  %2553 = vmatprep.subr.bf16.mxu1 %v2910_v4 }
  0x15   :  { %2333 = vmatmul.mubr.msk.f32.vlgmr.msra.gmra.mrb[0].mxu0 %vm65_vm0, %v53_v15  ;;  %2344 = vmatmul.mubr.msk.f32.vlgmr.msra.gmra.mrb[0].mxu1 %vm65_vm0, %v151_v16 }
  0x16   :  { %2549 = vmatpush3.bf16.msra.mxu0 %v3032_v8  ;;  %2354 = vmatprep.mubr.msk.f32.mxu0 %vm2911_vm1, %v2912_v13 }
  0x17   :  { %2550 = vmatprep.subr.bf16.mxu0 %v2910_v4  ;;  %2555 = vmatpush3.bf16.msra.mxu1 %v3032_v8 }
  0x18   :  { %2556 = vmatprep.subr.bf16.mxu1 %v2910_v4  ;;  %2365 = vmatprep.mubr.msk.f32.mxu1 %vm2911_vm1, %v2912_v13 }
  0x1a   :  { %2552 = vmatpush3.bf16.msra.mxu0 %v3047_v14 }
  0x1b   :  { %2558 = vmatpush3.bf16.msra.mxu1 %v3047_v14  ;;  %2559 = vmatprep.subr.bf16.mxu0 %v2910_v4 }
  0x1c   :  { %2565 = vmatprep.subr.bf16.mxu1 %v2910_v4 }
  0xe8   :  { %v2334_v18 = vpop.f32.mrb[0].mxu0  ;;  %v222_v19 = vpop.f32.mrb[0].mxu1 }
  0xe9   :  { %v3076_v20 = vadd.f32 %v2334_v18, %v2185_v17  ;;  %v138_v21 = vpop.f32.mrb[1].mxu0  ;;  %v2345_v22 = vpop.f32.mrb[1].mxu1 }
  0xea   :  { %v3078_v23 = vadd.f32 %v2185_v17, %v138_v21 }
  0xec   :  { %v226_v24 = vadd.f32 %v222_v19, %v3078_v23 }
  0xee   :  { %2666 = vtanh.f32 %v226_v24  ;;  %v2189_v27 = vmul.f32 -1.442695, %v226_v24 }
  0xf0   :  { %2668 = vpow2.f32 %v2189_v27 }
  0xf8   :  { %v2667_v25 = vpop.eup %2666 }
  0xf9   :  { %240 = vrot.lane.b32.xlu0 %v2667_v25, %s2913_s19 }
  0xfa   :  { %v2669_v28 = vpop.eup %2668 }
  0xfb   :  { %v230_v29 = vadd.f32 1.0, %v2669_v28 }
  0xfd   :  { %235 = vrot.lane.b32.xlu0 %v152_v26, %s2914_s3  ;;  %2670 = vrcp.f32 %v230_v29 }
 0x107   :  { %v2671_v30 = vpop.eup %2670 }
 0x16b   :  { %v241_v31 = vpop.permute.xlu0 %240 }
 0x16c   :  { %v243_v32 = vmul.f32 %v2671_v30, %v241_v31 }
 0x16e   :  { %245 = vrot.lane.b32.xlu1 %v243_v32, %s2914_s3 }
 0x16f   :  { %v236_v33 = vpop.permute.xlu0 %235 }
 0x170   :  { %v238_v34 = vmul.f32 %v2671_v30, %v236_v33 }
 0x1e0   :  { %v246_v35 = vpop.permute.xlu1 %245 }
 0x1e1   :  { %v248_v36 = vadd.f32 %v246_v35, %v238_v34 }
 0x1e3   :  { %2672 = vtanh.f32 %v248_v36  ;;  %v345_v52 = vrot.slane %v248_v36, 6 }
 0x1ed   :  { %v2673_v37 = vpop.eup %2672 }
 0x1ee   :  { %251 = vrot.lane.b32.xlu1 %v2673_v37, %s2913_s19 }
 0x260   :  { %v252_v38 = vpop.permute.xlu1 %251 }
 0x261   :  { %v254_v39 = vmul.f32 %v2671_v30, %v252_v38 }
 0x263   :  { %256 = vrot.lane.b32.xlu0 %v254_v39, %s2914_s3 }
 0x2d5   :  { %v257_v40 = vpop.permute.xlu0 %256 }
 0x2d6   :  { %260 = vst.msk [vmem:[#allocation2] sm:$0x3] %vm259_vm2, %v257_v40  ;;  %2355 = vmatmul.mubr.msk.f32.vlgmr.msra.gmra.mrb[2].mxu0 %vm65_vm0, %v257_v40 }
 0x2d7   :  { %2561 = vmatpush3.bf16.msra.mxu0 %v3032_v8  ;;  %2376 = vmatprep.mubr.msk.f32.mxu0 %vm2911_vm1, %v2912_v13 }
 0x2d8   :  { %2562 = vmatprep.subr.bf16.mxu0 %v2910_v4 }
 0x2db   :  { %2564 = vmatpush3.bf16.msra.mxu0 %v3047_v14 }
 0x2dc   :  { %2571 = vmatprep.subr.bf16.mxu0 %v2910_v4 }
 0x3a9   :  { %v329_v41 = vpop.f32.mrb[2].mxu0 }
 0x3aa   :  { %v334_v42 = vrot.slane %v329_v41, 6  ;;  %v2356_v43 = vpop.f32.mrb[3].mxu0 }
 0x3ac   :  { %v336_v44 = vadd.f32 %v334_v42, %v3078_v23 }
 0x3ae   :  { %2674 = vtanh.f32 %v336_v44  ;;  %v2191_v46 = vmul.f32 -1.442695, %v336_v44 }
 0x3b0   :  { %2676 = vpow2.f32 %v2191_v46 }
 0x3b8   :  { %v2675_v45 = vpop.eup %2674 }
 0x3b9   :  { %349 = vrot.lane.b32.xlu1 %v2675_v45, %s2913_s19 }
 0x3ba   :  { %v2677_v47 = vpop.eup %2676 }
 0x3bb   :  { %v340_v48 = vadd.f32 1.0, %v2677_v47 }
 0x3bd   :  { %2678 = vrcp.f32 %v340_v48 }
 0x3c7   :  { %v2679_v49 = vpop.eup %2678 }
 0x3c8   :  { %v347_v53 = vmul.f32 %v2679_v49, %v345_v52 }
 0x42b   :  { %v350_v50 = vpop.permute.xlu1 %349 }
 0x42c   :  { %v352_v51 = vmul.f32 %v2679_v49, %v350_v50 }
 0x42e   :  { %354 = vrot.lane.b32.xlu0 %v352_v51, %s2914_s3 }
 0x4a0   :  { %v355_v54 = vpop.permute.xlu0 %354 }
 0x4a1   :  { %v357_v55 = vadd.f32 %v355_v54, %v347_v53 }
 0x4a3   :  { %2680 = vtanh.f32 %v357_v55  ;;  %v457_v10 = vrot.slane %v357_v55, 6 }
 0x4ad   :  { %v2681_v56 = vpop.eup %2680 }
 0x4ae   :  { %360 = vrot.lane.b32.xlu1 %v2681_v56, %s2913_s19 }
 0x520   :  { %v361_v57 = vpop.permute.xlu1 %360 }
 0x521   :  { %v3101_v58 = vmul.f32 %v2679_v49, %v361_v57 }
 0x523   :  { %v370_v59 = vrot.slane %v3101_v58, 2 }
 0x525   :  { %371 = vrot.lane.b32.xlu0 %v370_v59, %s2914_s3 }
 0x597   :  { %v372_v60 = vpop.permute.xlu0 %371 }
 0x598   :  { %2366 = vmatmul.mubr.msk.f32.vlgmr.msra.gmra.mrb[2].mxu1 %vm65_vm0, %v372_v60 }
 0x599   :  { %2567 = vmatpush3.bf16.msra.mxu1 %v3032_v8  ;;  %2387 = vmatprep.mubr.msk.f32.mxu1 %vm2911_vm1, %v2912_v13 }
 0x59a   :  { %2568 = vmatprep.subr.bf16.mxu1 %v2910_v4 }
 0x59d   :  { %2570 = vmatpush3.bf16.msra.mxu1 %v3047_v14 }
 0x59e   :  { %2577 = vmatprep.subr.bf16.mxu1 %v2910_v4 }
 0x66b   :  { %v441_v61 = vpop.f32.mrb[2].mxu1 }
 0x66c   :  { %v446_v62 = vrot.slane %v441_v61, 4  ;;  %v2367_v63 = vpop.f32.mrb[3].mxu1 }
 0x66e   :  { %v448_v0 = vadd.f32 %v446_v62, %v3078_v23 }
 0x670   :  { %2682 = vtanh.f32 %v448_v0  ;;  %v2193_v2 = vmul.f32 -1.442695, %v448_v0 }
 0x672   :  { %2684 = vpow2.f32 %v2193_v2 }
 0x67a   :  { %v2683_v1 = vpop.eup %2682 }
 0x67b   :  { %461 = vrot.lane.b32.xlu1 %v2683_v1, %s2913_s19 }
 0x67c   :  { %v2685_v3 = vpop.eup %2684 }
 0x67d   :  { %v452_v5 = vadd.f32 1.0, %v2685_v3 }
 0x67f   :  { %2686 = vrcp.f32 %v452_v5 }
 0x689   :  { %v2687_v6 = vpop.eup %2686 }
 0x68a   :  { %v459_v11 = vmul.f32 %v2687_v6, %v457_v10 }
 0x6ed   :  { %v462_v7 = vpop.permute.xlu1 %461 }
 0x6ee   :  { %v464_v9 = vmul.f32 %v2687_v6, %v462_v7 }
 0x6f0   :  { %466 = vrot.lane.b32.xlu0 %v464_v9, %s2914_s3 }
 0x762   :  { %v467_v12 = vpop.permute.xlu0 %466 }
 0x763   :  { %v469_v15 = vadd.f32 %v467_v12, %v459_v11 }
 0x765   :  { %2688 = vtanh.f32 %v469_v15  ;;  %v569_v34 = vrot.slane %v469_v15, 6 }
 0x76f   :  { %v2689_v16 = vpop.eup %2688 }
 0x770   :  { %472 = vrot.lane.b32.xlu1 %v2689_v16, %s2913_s19 }
 0x7e2   :  { %v473_v17 = vpop.permute.xlu1 %472 }
 0x7e3   :  { %v3116_v18 = vmul.f32 %v2687_v6, %v473_v17 }
 0x7e5   :  { %v482_v19 = vrot.slane %v3116_v18, 4 }
 0x7e7   :  { %483 = vrot.lane.b32.xlu0 %v482_v19, %s2914_s3 }
 0x859   :  { %v484_v21 = vpop.permute.xlu0 %483 }
 0x85a   :  { %2377 = vmatmul.mubr.msk.f32.vlgmr.msra.gmra.mrb[4].mxu0 %vm65_vm0, %v484_v21 }
 0x85b   :  { %2573 = vmatpush3.bf16.msra.mxu0 %v3032_v8  ;;  %2398 = vmatprep.mubr.msk.f32.mxu0 %vm2911_vm1, %v2912_v13 }
 0x85c   :  { %2574 = vmatprep.subr.bf16.mxu0 %v2910_v4 }
 0x85f   :  { %2576 = vmatpush3.bf16.msra.mxu0 %v3047_v14 }
 0x860   :  { %2583 = vmatprep.subr.bf16.mxu0 %v2910_v4 }
 0x92d   :  { %v553_v22 = vpop.f32.mrb[4].mxu0 }
 0x92e   :  { %v558_v24 = vrot.slane %v553_v22, 2  ;;  %v2378_v25 = vpop.f32.mrb[5].mxu0 }
 0x930   :  { %v560_v26 = vadd.f32 %v558_v24, %v3078_v23 }
 0x932   :  { %2690 = vtanh.f32 %v560_v26  ;;  %v2195_v28 = vmul.f32 -1.442695, %v560_v26 }
 0x934   :  { %2692 = vpow2.f32 %v2195_v28 }
 0x93c   :  { %v2691_v27 = vpop.eup %2690 }
 0x93d   :  { %573 = vrot.lane.b32.xlu1 %v2691_v27, %s2913_s19 }
 0x93e   :  { %v2693_v29 = vpop.eup %2692 }
 0x93f   :  { %v564_v30 = vadd.f32 1.0, %v2693_v29 }
 0x941   :  { %2694 = vrcp.f32 %v564_v30 }
 0x94b   :  { %v2695_v31 = vpop.eup %2694 }
 0x94c   :  { %v571_v35 = vmul.f32 %v2695_v31, %v569_v34 }
 0x9af   :  { %v574_v32 = vpop.permute.xlu1 %573 }
 0x9b0   :  { %v576_v33 = vmul.f32 %v2695_v31, %v574_v32 }
 0x9b2   :  { %578 = vrot.lane.b32.xlu0 %v576_v33, %s2914_s3 }
 0xa24   :  { %v579_v36 = vpop.permute.xlu0 %578 }
 0xa25   :  { %v581_v37 = vadd.f32 %v579_v36, %v571_v35 }
 0xa27   :  { %2696 = vtanh.f32 %v581_v37  ;;  %v678_v52 = vrot.slane %v581_v37, 6 }
 0xa31   :  { %v2697_v23 = vpop.eup %2696 }
 0xa32   :  { %584 = vrot.lane.b32.xlu1 %v2697_v23, %s2913_s19 }
 0xaa4   :  { %v585_v38 = vpop.permute.xlu1 %584 }
 0xaa5   :  { %v3131_v39 = vmul.f32 %v2695_v31, %v585_v38 }
 0xaa7   :  { %v594_v40 = vrot.slane %v3131_v39, 6 }
 0xaa9   :  { %595 = vrot.lane.b32.xlu0 %v594_v40, %s2914_s3 }
 0xb1b   :  { %v596_v41 = vpop.permute.xlu0 %595 }
 0xb1c   :  { %2388 = vmatmul.mubr.msk.f32.vlgmr.msra.gmra.mrb[4].mxu1 %vm65_vm0, %v596_v41 }
 0xb1d   :  { %2579 = vmatpush3.bf16.msra.mxu1 %v3032_v8  ;;  %2409 = vmatprep.mubr.msk.f32.mxu1 %vm2911_vm1, %v2912_v13 }
 0xb1e   :  { %2580 = vmatprep.subr.bf16.mxu1 %v2910_v4 }
 0xb21   :  { %2582 = vmatpush3.bf16.msra.mxu1 %v3047_v14 }
 0xbef   :  { %v665_v42 = vpop.f32.mrb[4].mxu1 }
 0xbf0   :  { %v669_v43 = vadd.f32 %v665_v42, %v3076_v20  ;;  %v2389_v44 = vpop.f32.mrb[5].mxu1 }
 0xbf2   :  { %2698 = vtanh.f32 %v669_v43  ;;  %v2197_v46 = vmul.f32 -1.442695, %v669_v43 }
 0xbf4   :  { %2700 = vpow2.f32 %v2197_v46 }
 0xbfc   :  { %v2699_v45 = vpop.eup %2698 }
 0xbfd   :  { %682 = vrot.lane.b32.xlu1 %v2699_v45, %s2913_s19 }
 0xbfe   :  { %v2701_v47 = vpop.eup %2700 }
 0xbff   :  { %v673_v48 = vadd.f32 1.0, %v2701_v47 }
 0xc01   :  { %2702 = vrcp.f32 %v673_v48 }
 0xc0b   :  { %v2703_v49 = vpop.eup %2702 }
 0xc0c   :  { %v680_v53 = vmul.f32 %v2703_v49, %v678_v52 }
 0xc6f   :  { %v683_v50 = vpop.permute.xlu1 %682 }
 0xc70   :  { %v685_v51 = vmul.f32 %v2703_v49, %v683_v50 }
 0xc72   :  { %687 = vrot.lane.b32.xlu0 %v685_v51, %s2914_s3 }
 0xce4   :  { %v688_v54 = vpop.permute.xlu0 %687 }
 0xce5   :  { %v690_v55 = vadd.f32 %v688_v54, %v680_v53 }
 0xce7   :  { %2704 = vtanh.f32 %v690_v55 }
 0xcf1   :  { %v2705_v56 = vpop.eup %2704 }
 0xcf2   :  { %693 = vrot.lane.b32.xlu1 %v2705_v56, %s2913_s19 }
 0xd64   :  { %v694_v57 = vpop.permute.xlu1 %693 }
 0xd65   :  { %v696_v59 = vmul.f32 %v2703_v49, %v694_v57 }
 0xd67   :  { %698 = vrot.lane.b32.xlu0 %v696_v59, %s2914_s3  ;;  %v1040_v59 = vld [vmem:[%s3450_s6] sm:$0xff] }
 0xdd9   :  { %v699_v60 = vpop.permute.xlu0 %698 }
 0xdda   :  { %701 = vst.msk [vmem:[#allocation2 + $0x8] sm:$0x3] %vm259_vm2, %v699_v60  ;;  %2399 = vmatmul.mubr.msk.f32.vlgmr.msra.gmra.mrb[6].mxu0 %vm65_vm0, %v699_v60  ;;  %v1041_v60 = vld [vmem:[%s3450_s6 + $0x8] sm:$0xff] }
 0xddb   :  { %2585 = vmatpush3.bf16.msra.mxu0 %v3032_v8  ;;  %2420 = vmatprep.mubr.msk.f32.mxu0 %vm2911_vm1, %v2912_v13 }
 0xddc   :  { %2586 = vmatprep.subr.bf16.mxu0 %v2910_v4 }
 0xddf   :  { %2588 = vmatpush3.bf16.msra.mxu0 %v3047_v14  ;;  %v786_v14 = vrot.slane %v690_v55, 6 }
 0xde0   :  { %2597 = vmatprep.subr.bf16.mxu0 %v2910_v4 }
 0xead   :  { %v770_v61 = vpop.f32.mrb[6].mxu0 }
 0xeae   :  { %v775_v62 = vrot.slane %v770_v61, 6  ;;  %v2400_v63 = vpop.f32.mrb[7].mxu0  ;;  %v2589_v61 = vpack.c.bf16 %v1041_v60, %v1040_v59 }
 0xeaf   :  { %v1042_v63 = vld [vmem:[%s3450_s6 + $0x10] sm:$0xff] }
 0xeb0   :  { %v777_v0 = vadd.f32 %v775_v62, %v3076_v20  ;;  %2590 = vmatprep.subr.bf16.mxu1 %v2589_v61  ;;  %v1132_v62 = vld [vmem:[%s3451_s7] sm:$0xff] }
 0xeb2   :  { %2706 = vtanh.f32 %v777_v0  ;;  %v2199_v2 = vmul.f32 -1.442695, %v777_v0 }
 0xeb4   :  { %2708 = vpow2.f32 %v2199_v2  ;;  %v1134_v2 = vld [vmem:[%s3451_s7 + $0x10] sm:$0xff] }
 0xebc   :  { %v2707_v1 = vpop.eup %2706 }
 0xebd   :  { %790 = vrot.lane.b32.xlu1 %v2707_v1, %s2913_s19  ;;  %v1043_v1 = vld [vmem:[%s3450_s6 + $0x18] sm:$0xff] }
 0xebe   :  { %v2709_v8 = vpop.eup %2708 }
 0xebf   :  { %v781_v3 = vadd.f32 1.0, %v2709_v8  ;;  %v1135_v8 = vld [vmem:[%s3451_s7 + $0x18] sm:$0xff] }
 0xec1   :  { %2710 = vrcp.f32 %v781_v3  ;;  %v2593_v3 = vpack.c.bf16 %v1043_v1, %v1042_v63 }
 0xecb   :  { %v2711_v5 = vpop.eup %2710 }
 0xecc   :  { %v788_v9 = vmul.f32 %v2711_v5, %v786_v14 }
 0xf2f   :  { %v791_v6 = vpop.permute.xlu1 %790 }
 0xf30   :  { %v793_v7 = vmul.f32 %v2711_v5, %v791_v6  ;;  %v1136_v6 = vld [vmem:[%s3453_s9] sm:$0x3] }
 0xf32   :  { %795 = vrot.lane.b32.xlu0 %v793_v7, %s2914_s3 }
 0xfa4   :  { %v796_v10 = vpop.permute.xlu0 %795 }
 0xfa5   :  { %v798_v11 = vadd.f32 %v796_v10, %v788_v9  ;;  %v1137_v10 = vld [vmem:[%s3454_s10] sm:$0x3] }
 0xfa7   :  { %2712 = vtanh.f32 %v798_v11  ;;  %v897_v33 = vrot.slane %v798_v11, 6 }
 0xfb1   :  { %v2713_v12 = vpop.eup %2712 }
 0xfb2   :  { %801 = vrot.lane.b32.xlu1 %v2713_v12, %s2913_s19 }
0x1024   :  { %v802_v15 = vpop.permute.xlu1 %801 }
0x1025   :  { %v3158_v16 = vmul.f32 %v2711_v5, %v802_v15  ;;  %v3217_v5 = vpack.c.bf16 %v1135_v8, %v1134_v2 }
0x1027   :  { %v810_v17 = vrot.slane %v3158_v16, 2 }
0x1029   :  { %811 = vrot.lane.b32.xlu0 %v810_v17, %s2914_s3 }
0x109b   :  { %v812_v19 = vpop.permute.xlu0 %811 }
0x109c   :  { %2410 = vmatmul.mubr.msk.f32.vlgmr.msra.gmra.mrb[6].mxu1 %vm65_vm0, %v812_v19 }
0x109d   :  { %2592 = vmatpush3.bf16.msra.mxu1 %v2589_v61 }
0x109e   :  { %2594 = vmatprep.subr.bf16.mxu1 %v2593_v3 }
0x10a1   :  { %2596 = vmatpush3.bf16.msra.mxu1 %v2593_v3 }
0x10a2   :  { %2603 = vmatprep.subr.bf16.mxu1 %v2910_v4 }
0x116f   :  { %v881_v21 = vpop.f32.mrb[6].mxu1 }
0x1170   :  { %v886_v22 = vrot.slane %v881_v21, 4  ;;  %v2411_v24 = vpop.f32.mrb[7].mxu1  ;;  %v2204_v21 = vld [vmem:[%s3452_s8] ss:$0 sm:$0xff]  ;;  %s2915_s8 = smov 96  }
0x1172   :  { %v888_v25 = vadd.f32 %v886_v22, %v3076_v20 }
0x1174   :  { %2714 = vtanh.f32 %v888_v25  ;;  %v2201_v27 = vmul.f32 -1.442695, %v888_v25 }
0x1176   :  { %2716 = vpow2.f32 %v2201_v27 }
0x117e   :  { %v2715_v26 = vpop.eup %2714 }
0x117f   :  { %901 = vrot.lane.b32.xlu1 %v2715_v26, %s2913_s19 }
0x1180   :  { %v2717_v28 = vpop.eup %2716 }
0x1181   :  { %v892_v29 = vadd.f32 1.0, %v2717_v28 }
0x1183   :  { %2718 = vrcp.f32 %v892_v29 }
0x118d   :  { %v2719_v30 = vpop.eup %2718 }
0x118e   :  { %v899_v34 = vmul.f32 %v2719_v30, %v897_v33 }
0x11f1   :  { %v902_v31 = vpop.permute.xlu1 %901 }
0x11f2   :  { %v904_v32 = vmul.f32 %v2719_v30, %v902_v31 }
0x11f4   :  { %906 = vrot.lane.b32.xlu0 %v904_v32, %s2914_s3 }
0x1266   :  { %v907_v35 = vpop.permute.xlu0 %906 }
0x1267   :  { %v909_v36 = vadd.f32 %v907_v35, %v899_v34 }
0x1269   :  { %2720 = vtanh.f32 %v909_v36 }
0x1273   :  { %v2721_v37 = vpop.eup %2720 }
0x1274   :  { %912 = vrot.lane.b32.xlu1 %v2721_v37, %s2913_s19 }
0x12e6   :  { %v913_v23 = vpop.permute.xlu1 %912 }
0x12e7   :  { %v915_v38 = vmul.f32 %v2719_v30, %v913_v23 }
0x12e9   :  { %v921_v40 = vrot.slane %v915_v38, 4 }
0x12eb   :  { %922 = vrot.lane.b32.xlu0 %v921_v40, %s2914_s3 }
0x135d   :  { %v923_v41 = vpop.permute.xlu0 %922 }
0x135e   :  { %2421 = vmatmul.mubr.msk.f32.vlgmr.msra.gmra.mrb[8].mxu0 %vm65_vm0, %v923_v41 }
0x135f   :  { %2442 = vmatprep.mubr.msk.f32.mxu0 %vm2911_vm1, %v2912_v13 }
0x1431   :  { %v992_v42 = vpop.f32.mrb[8].mxu0 }
0x1432   :  { %v997_v43 = vrot.slane %v992_v42, 2  ;;  %v2422_v44 = vpop.f32.mrb[9].mxu0 }
0x1434   :  { %v999_v45 = vadd.f32 %v997_v43, %v3076_v20  ;;  %v1008_v20 = vrot.slane %v909_v36, 6 }
0x1436   :  { %2722 = vtanh.f32 %v999_v45  ;;  %v2203_v47 = vmul.f32 -1.442695, %v999_v45 }
0x1438   :  { %2724 = vpow2.f32 %v2203_v47 }
0x1440   :  { %v2723_v46 = vpop.eup %2722 }
0x1441   :  { %1012 = vrot.lane.b32.xlu1 %v2723_v46, %s2913_s19 }
0x1442   :  { %v2725_v48 = vpop.eup %2724 }
0x1443   :  { %v1003_v49 = vadd.f32 1.0, %v2725_v48 }
0x1445   :  { %2726 = vrcp.f32 %v1003_v49 }
0x144f   :  { %v2727_v50 = vpop.eup %2726 }
0x1450   :  { %v1010_v53 = vmul.f32 %v2727_v50, %v1008_v20 }
0x14b3   :  { %v1013_v51 = vpop.permute.xlu1 %1012 }
0x14b4   :  { %v1015_v52 = vmul.f32 %v2727_v50, %v1013_v51 }
0x14b6   :  { %1017 = vrot.lane.b32.xlu0 %v1015_v52, %s2914_s3 }
0x14ba   :  { %365 = vrot.lane.b32.xlu0 %v3101_v58, %s2914_s3 }
0x14be   :  { %589 = vrot.lane.b32.xlu0 %v3131_v39, %s2914_s3 }
0x14c2   :  { %917 = vrot.lane.b32.xlu0 %v915_v38, %s2914_s3 }
0x1528   :  { %v1018_v54 = vpop.permute.xlu0 %1017 }
0x1529   :  { %v3179_v55 = vadd.f32 %v1018_v54, %v1010_v53 }
0x152b   :  { %2728 = vtanh.f32 %v3179_v55 }
0x152c   :  { %v366_v56 = vpop.permute.xlu0 %365 }
0x152d   :  { %369 = vst.msk [vmem:[#allocation2] sm:$0xc] %vm368_vm3, %v366_v56 }
0x1530   :  { %v590_v57 = vpop.permute.xlu0 %589 }
0x1531   :  { %593 = vst.msk [vmem:[#allocation2] sm:$0xc0] %vm592_vm4, %v590_v57 }
0x1534   :  { %v918_v58 = vpop.permute.xlu0 %917 }
0x1535   :  { %v2729_v39 = vpop.eup %2728  ;;  %920 = vst.msk [vmem:[#allocation2 + $0x8] sm:$0x30] %vm480_vm5, %v918_v58 }
0x1536   :  { %1023 = vrot.lane.b32.xlu1 %v2729_v39, %s2913_s19 }
0x153a   :  { %477 = vrot.lane.b32.xlu1 %v3116_v18, %s2914_s3  ;;  %v1133_v18 = vld [vmem:[%s3451_s7 + $0x8] sm:$0xff] }
0x153b   :  { %v3205_v0 = vpack.c.bf16 %v1133_v18, %v1132_v62 }
0x153d   :  { %2599 = vmatpush3.bf16.msra.mxu0 %v3205_v0 }
0x153e   :  { %806 = vrot.lane.b32.xlu1 %v3158_v16, %s2914_s3  ;;  %2600 = vmatprep.subr.bf16.mxu0 %v2910_v4 }
0x1541   :  { %2602 = vmatpush3.bf16.msra.mxu0 %v3217_v5 }
0x1542   :  { %2609 = vmatprep.subr.bf16.mxu0 %v2910_v4 }
0x1544   :  { %2443 = vmatmul.mubr.msk.f32.vlgmr.msra.gmra.mrb[10].mxu0 %vm65_vm0, %v1136_v6 }
0x1545   :  { %2611 = vmatpush3.bf16.msra.mxu0 %v3205_v0  ;;  %2464 = vmatprep.mubr.msk.f32.mxu0 %vm2911_vm1, %v2912_v13 }
0x1546   :  { %2612 = vmatprep.subr.bf16.mxu0 %v2910_v4 }
0x1549   :  { %2614 = vmatpush3.bf16.msra.mxu0 %v3217_v5 }
0x154a   :  { %2621 = vmatprep.subr.bf16.mxu0 %v2910_v4 }
0x15a8   :  { %v1024_v7 = vpop.permute.xlu1 %1023 }
0x15a9   :  { %v1026_v14 = vmul.f32 %v2727_v50, %v1024_v7 }
0x15ab   :  { %1028 = vrot.lane.b32.xlu1 %v1026_v14, %s2914_s3 }
0x15ac   :  { %v478_v9 = vpop.permute.xlu1 %477 }
0x15ad   :  { %481 = vst.msk [vmem:[#allocation2] sm:$0x30] %vm480_vm5, %v478_v9 }
0x15af   :  { %1220 = vrot.lane.b32.xlu1 %v1137_v10, %s2914_s3 }
0x15b0   :  { %v807_v11 = vpop.permute.xlu1 %806 }
0x15b1   :  { %809 = vst.msk [vmem:[#allocation2 + $0x8] sm:$0xc] %vm368_vm3, %v807_v11 }
0x15b4   :  { %v1038_v12 = vld [vmem:[#allocation2] sm:$0xff] }
0x15b5   :  { %2431 = vmatprep.mubr.msk.f32.mxu1 %vm65_vm0, %v1038_v12 }
0x1617   :  { %v1207_v17 = vpop.f32.mrb[10].mxu0 }
0x1618   :  { %v2444_v19 = vpop.f32.mrb[11].mxu0 }
0x161d   :  { %v1029_v15 = vpop.permute.xlu1 %1028 }
0x161e   :  { %1031 = vst.msk [vmem:[#allocation2 + $0x8] sm:$0xc0] %vm592_vm4, %v1029_v15  ;;  %1032 = vst.msk [vmem:[#allocation5 - $0x6] sm:$0xc0] %vm592_vm4, %v1029_v15 }
0x1621   :  { %v1221_v35 = vpop.permute.xlu1 %1220 }
0x1625   :  { %v1039_v16 = vld [vmem:[#allocation2 + $0x8] sm:$0xff] }
0x1626   :  { %2432 = vmatmul.mubr.msk.f32.vlgmr.msra.gmra.mrb[8].mxu1 %vm65_vm0, %v1039_v16 }
0x1627   :  { %2605 = vmatpush3.bf16.msra.mxu1 %v3205_v0  ;;  %2453 = vmatprep.mubr.msk.f32.mxu1 %vm2911_vm1, %v2912_v13 }
0x1628   :  { %2606 = vmatprep.subr.bf16.mxu1 %v2910_v4 }
0x162b   :  { %2608 = vmatpush3.bf16.msra.mxu1 %v3217_v5 }
0x162c   :  { %2615 = vmatprep.subr.bf16.mxu1 %v2910_v4 }
0x16f9   :  { %v2433_v22 = vpop.f32.mrb[8].mxu1 }
0x16fa   :  { %v3253_v24 = vadd.f32 %v2433_v22, %v2204_v21  ;;  %v1123_v25 = vpop.f32.mrb[9].mxu1 }
0x16fb   :  { %v3255_v26 = vadd.f32 %v2204_v21, %v1123_v25 }
0x16fd   :  { %v1211_v27 = vadd.f32 %v1207_v17, %v3255_v26 }
0x16ff   :  { %2730 = vtanh.f32 %v1211_v27  ;;  %v2208_v29 = vmul.f32 -1.442695, %v1211_v27 }
0x1701   :  { %2732 = vpow2.f32 %v2208_v29 }
0x1709   :  { %v2731_v28 = vpop.eup %2730 }
0x170a   :  { %1225 = vrot.lane.b32.xlu0 %v2731_v28, %s2913_s19 }
0x170b   :  { %v2733_v30 = vpop.eup %2732 }
0x170c   :  { %v1215_v31 = vadd.f32 1.0, %v2733_v30 }
0x170e   :  { %2734 = vrcp.f32 %v1215_v31 }
0x1718   :  { %v2735_v32 = vpop.eup %2734 }
0x1719   :  { %v1223_v36 = vmul.f32 %v2735_v32, %v1221_v35 }
0x177c   :  { %v1226_v33 = vpop.permute.xlu0 %1225 }
0x177d   :  { %v1228_v34 = vmul.f32 %v2735_v32, %v1226_v33 }
0x177f   :  { %1230 = vrot.lane.b32.xlu0 %v1228_v34, %s2914_s3 }
0x17f1   :  { %v1231_v37 = vpop.permute.xlu0 %1230 }
0x17f2   :  { %v1233_v23 = vadd.f32 %v1231_v37, %v1223_v36 }
0x17f4   :  { %2736 = vtanh.f32 %v1233_v23  ;;  %v1329_v53 = vrot.slane %v1233_v23, 6 }
0x17fe   :  { %v2737_v38 = vpop.eup %2736 }
0x17ff   :  { %1236 = vrot.lane.b32.xlu1 %v2737_v38, %s2913_s19 }
0x1871   :  { %v1237_v40 = vpop.permute.xlu1 %1236 }
0x1872   :  { %v1239_v41 = vmul.f32 %v2735_v32, %v1237_v40 }
0x1874   :  { %1241 = vrot.lane.b32.xlu0 %v1239_v41, %s2914_s3 }
0x18e6   :  { %v1242_v42 = vpop.permute.xlu0 %1241 }
0x18e7   :  { %1244 = vst.msk [vmem:[#allocation2] sm:$0x3] %vm259_vm2, %v1242_v42  ;;  %2454 = vmatmul.mubr.msk.f32.vlgmr.msra.gmra.mrb[10].mxu1 %vm65_vm0, %v1242_v42 }
0x18e8   :  { %2617 = vmatpush3.bf16.msra.mxu1 %v3205_v0  ;;  %2475 = vmatprep.mubr.msk.f32.mxu1 %vm2911_vm1, %v2912_v13 }
0x18e9   :  { %2618 = vmatprep.subr.bf16.mxu1 %v2910_v4 }
0x18ec   :  { %2620 = vmatpush3.bf16.msra.mxu1 %v3217_v5 }
0x18ed   :  { %2627 = vmatprep.subr.bf16.mxu1 %v2910_v4 }
0x19ba   :  { %v1313_v43 = vpop.f32.mrb[10].mxu1 }
0x19bb   :  { %v1318_v44 = vrot.slane %v1313_v43, 6  ;;  %v2455_v45 = vpop.f32.mrb[11].mxu1 }
0x19bd   :  { %v1320_v46 = vadd.f32 %v1318_v44, %v3255_v26 }
0x19bf   :  { %2738 = vtanh.f32 %v1320_v46  ;;  %v2210_v48 = vmul.f32 -1.442695, %v1320_v46 }
0x19c1   :  { %2740 = vpow2.f32 %v2210_v48 }
0x19c9   :  { %v2739_v47 = vpop.eup %2738 }
0x19ca   :  { %1333 = vrot.lane.b32.xlu1 %v2739_v47, %s2913_s19 }
0x19cb   :  { %v2741_v49 = vpop.eup %2740 }
0x19cc   :  { %v1324_v50 = vadd.f32 1.0, %v2741_v49 }
0x19ce   :  { %2742 = vrcp.f32 %v1324_v50 }
0x19d8   :  { %v2743_v51 = vpop.eup %2742 }
0x19d9   :  { %v1331_v54 = vmul.f32 %v2743_v51, %v1329_v53 }
0x1a3c   :  { %v1334_v52 = vpop.permute.xlu1 %1333 }
0x1a3d   :  { %v1336_v20 = vmul.f32 %v2743_v51, %v1334_v52 }
0x1a3f   :  { %1338 = vrot.lane.b32.xlu0 %v1336_v20, %s2914_s3 }
0x1ab1   :  { %v1339_v56 = vpop.permute.xlu0 %1338 }
0x1ab2   :  { %v1341_v57 = vadd.f32 %v1339_v56, %v1331_v54 }
0x1ab4   :  { %2744 = vtanh.f32 %v1341_v57  ;;  %v1440_v10 = vrot.slane %v1341_v57, 6 }
0x1abe   :  { %v2745_v58 = vpop.eup %2744 }
0x1abf   :  { %1344 = vrot.lane.b32.xlu1 %v2745_v58, %s2913_s19 }
0x1b31   :  { %v1345_v39 = vpop.permute.xlu1 %1344 }
0x1b32   :  { %v3274_v59 = vmul.f32 %v2743_v51, %v1345_v39 }
0x1b34   :  { %v1353_v60 = vrot.slane %v3274_v59, 2 }
0x1b36   :  { %1354 = vrot.lane.b32.xlu0 %v1353_v60, %s2914_s3 }
0x1ba8   :  { %v1355_v61 = vpop.permute.xlu0 %1354 }
0x1ba9   :  { %2465 = vmatmul.mubr.msk.f32.vlgmr.msra.gmra.mrb[12].mxu0 %vm65_vm0, %v1355_v61 }
0x1baa   :  { %2623 = vmatpush3.bf16.msra.mxu0 %v3205_v0  ;;  %2486 = vmatprep.mubr.msk.f32.mxu0 %vm2911_vm1, %v2912_v13 }
0x1bab   :  { %2624 = vmatprep.subr.bf16.mxu0 %v2910_v4 }
0x1bae   :  { %2626 = vmatpush3.bf16.msra.mxu0 %v3217_v5 }
0x1baf   :  { %2633 = vmatprep.subr.bf16.mxu0 %v2910_v4 }
0x1c7c   :  { %v1424_v62 = vpop.f32.mrb[12].mxu0 }
0x1c7d   :  { %v1429_v18 = vrot.slane %v1424_v62, 4  ;;  %v2466_v63 = vpop.f32.mrb[13].mxu0 }
0x1c7f   :  { %v1431_v1 = vadd.f32 %v1429_v18, %v3255_v26 }
0x1c81   :  { %2746 = vtanh.f32 %v1431_v1  ;;  %v2212_v8 = vmul.f32 -1.442695, %v1431_v1 }
0x1c83   :  { %2748 = vpow2.f32 %v2212_v8 }
0x1c8b   :  { %v2747_v2 = vpop.eup %2746 }
0x1c8c   :  { %1444 = vrot.lane.b32.xlu1 %v2747_v2, %s2913_s19 }
0x1c8d   :  { %v2749_v3 = vpop.eup %2748 }
0x1c8e   :  { %v1435_v6 = vadd.f32 1.0, %v2749_v3 }
0x1c90   :  { %2750 = vrcp.f32 %v1435_v6 }
0x1c9a   :  { %v2751_v7 = vpop.eup %2750 }
0x1c9b   :  { %v1442_v11 = vmul.f32 %v2751_v7, %v1440_v10 }
0x1cfe   :  { %v1445_v14 = vpop.permute.xlu1 %1444 }
0x1cff   :  { %v1447_v9 = vmul.f32 %v2751_v7, %v1445_v14 }
0x1d01   :  { %1449 = vrot.lane.b32.xlu0 %v1447_v9, %s2914_s3 }
0x1d73   :  { %v1450_v12 = vpop.permute.xlu0 %1449 }
0x1d74   :  { %v1452_v15 = vadd.f32 %v1450_v12, %v1442_v11 }
0x1d76   :  { %2752 = vtanh.f32 %v1452_v15  ;;  %v1551_v37 = vrot.slane %v1452_v15, 6 }
0x1d80   :  { %v2753_v16 = vpop.eup %2752 }
0x1d81   :  { %1455 = vrot.lane.b32.xlu1 %v2753_v16, %s2913_s19 }
0x1df3   :  { %v1456_v17 = vpop.permute.xlu1 %1455 }
0x1df4   :  { %v3289_v19 = vmul.f32 %v2751_v7, %v1456_v17 }
0x1df6   :  { %v1464_v21 = vrot.slane %v3289_v19, 4 }
0x1df8   :  { %1465 = vrot.lane.b32.xlu0 %v1464_v21, %s2914_s3 }
0x1e6a   :  { %v1466_v22 = vpop.permute.xlu0 %1465 }
0x1e6b   :  { %2476 = vmatmul.mubr.msk.f32.vlgmr.msra.gmra.mrb[12].mxu1 %vm65_vm0, %v1466_v22 }
0x1e6c   :  { %2629 = vmatpush3.bf16.msra.mxu1 %v3205_v0  ;;  %2497 = vmatprep.mubr.msk.f32.mxu1 %vm2911_vm1, %v2912_v13 }
0x1e6d   :  { %2630 = vmatprep.subr.bf16.mxu1 %v2910_v4 }
0x1e70   :  { %2632 = vmatpush3.bf16.msra.mxu1 %v3217_v5 }
0x1e71   :  { %2639 = vmatprep.subr.bf16.mxu1 %v2910_v4 }
0x1f3e   :  { %v1535_v25 = vpop.f32.mrb[12].mxu1 }
0x1f3f   :  { %v1540_v27 = vrot.slane %v1535_v25, 2  ;;  %v2477_v28 = vpop.f32.mrb[13].mxu1 }
0x1f41   :  { %v1542_v29 = vadd.f32 %v1540_v27, %v3255_v26 }
0x1f43   :  { %2754 = vtanh.f32 %v1542_v29  ;;  %v2214_v31 = vmul.f32 -1.442695, %v1542_v29 }
0x1f45   :  { %2756 = vpow2.f32 %v2214_v31 }
0x1f4d   :  { %v2755_v30 = vpop.eup %2754 }
0x1f4e   :  { %1555 = vrot.lane.b32.xlu1 %v2755_v30, %s2913_s19 }
0x1f4f   :  { %v2757_v32 = vpop.eup %2756 }
0x1f50   :  { %v1546_v33 = vadd.f32 1.0, %v2757_v32 }
0x1f52   :  { %2758 = vrcp.f32 %v1546_v33 }
0x1f5c   :  { %v2759_v34 = vpop.eup %2758 }
0x1f5d   :  { %v1553_v23 = vmul.f32 %v2759_v34, %v1551_v37 }
0x1fc0   :  { %v1556_v35 = vpop.permute.xlu1 %1555 }
0x1fc1   :  { %v1558_v36 = vmul.f32 %v2759_v34, %v1556_v35 }
0x1fc3   :  { %1560 = vrot.lane.b32.xlu0 %v1558_v36, %s2914_s3 }
0x2035   :  { %v1561_v38 = vpop.permute.xlu0 %1560 }
0x2036   :  { %v1563_v40 = vadd.f32 %v1561_v38, %v1553_v23 }
0x2038   :  { %2760 = vtanh.f32 %v1563_v40  ;;  %v1659_v54 = vrot.slane %v1563_v40, 6 }
0x2042   :  { %v2761_v26 = vpop.eup %2760 }
0x2043   :  { %1566 = vrot.lane.b32.xlu1 %v2761_v26, %s2913_s19 }
0x20b5   :  { %v1567_v41 = vpop.permute.xlu1 %1566 }
0x20b6   :  { %v3304_v42 = vmul.f32 %v2759_v34, %v1567_v41 }
0x20b8   :  { %v1575_v43 = vrot.slane %v3304_v42, 6 }
0x20ba   :  { %1576 = vrot.lane.b32.xlu0 %v1575_v43, %s2914_s3 }
0x212c   :  { %v1577_v44 = vpop.permute.xlu0 %1576 }
0x212d   :  { %2487 = vmatmul.mubr.msk.f32.vlgmr.msra.gmra.mrb[14].mxu0 %vm65_vm0, %v1577_v44 }
0x212e   :  { %2635 = vmatpush3.bf16.msra.mxu0 %v3205_v0  ;;  %2508 = vmatprep.mubr.msk.f32.mxu0 %vm2911_vm1, %v2912_v13 }
0x212f   :  { %2636 = vmatprep.subr.bf16.mxu0 %v2910_v4 }
0x2132   :  { %2638 = vmatpush3.bf16.msra.mxu0 %v3217_v5 }
0x2200   :  { %v1646_v45 = vpop.f32.mrb[14].mxu0 }
0x2201   :  { %v1650_v46 = vadd.f32 %v1646_v45, %v3253_v24  ;;  %v2488_v47 = vpop.f32.mrb[15].mxu0 }
0x2203   :  { %2762 = vtanh.f32 %v1650_v46  ;;  %v2216_v49 = vmul.f32 -1.442695, %v1650_v46 }
0x2205   :  { %2764 = vpow2.f32 %v2216_v49 }
0x220d   :  { %v2763_v48 = vpop.eup %2762 }
0x220e   :  { %1663 = vrot.lane.b32.xlu1 %v2763_v48, %s2913_s19 }
0x220f   :  { %v2765_v50 = vpop.eup %2764 }
0x2210   :  { %v1654_v51 = vadd.f32 1.0, %v2765_v50 }
0x2212   :  { %2766 = vrcp.f32 %v1654_v51 }
0x221c   :  { %v2767_v52 = vpop.eup %2766 }
0x221d   :  { %v1661_v56 = vmul.f32 %v2767_v52, %v1659_v54 }
0x2280   :  { %v1664_v20 = vpop.permute.xlu1 %1663 }
0x2281   :  { %v1666_v53 = vmul.f32 %v2767_v52, %v1664_v20 }
0x2283   :  { %1668 = vrot.lane.b32.xlu0 %v1666_v53, %s2914_s3 }
0x22f5   :  { %v1669_v57 = vpop.permute.xlu0 %1668 }
0x22f6   :  { %v1671_v58 = vadd.f32 %v1669_v57, %v1661_v56 }
0x22f8   :  { %2768 = vtanh.f32 %v1671_v58 }
0x2302   :  { %v2769_v39 = vpop.eup %2768 }
0x2303   :  { %1674 = vrot.lane.b32.xlu1 %v2769_v39, %s2913_s19 }
0x2375   :  { %v1675_v60 = vpop.permute.xlu1 %1674 }
0x2376   :  { %v1677_v61 = vmul.f32 %v2767_v52, %v1675_v60 }
0x2378   :  { %1679 = vrot.lane.b32.xlu0 %v1677_v61, %s2914_s3  ;;  %v2022_v61 = vld [vmem:[%s3455_s11 + $0x8] sm:$0xff] }
0x23ea   :  { %v1680_v62 = vpop.permute.xlu0 %1679 }
0x23eb   :  { %1682 = vst.msk [vmem:[#allocation2 + $0x8] sm:$0x3] %vm259_vm2, %v1680_v62  ;;  %2498 = vmatmul.mubr.msk.f32.vlgmr.msra.gmra.mrb[14].mxu1 %vm65_vm0, %v1680_v62 }
0x23ec   :  { %2641 = vmatpush3.bf16.msra.mxu1 %v3205_v0  ;;  %2519 = vmatprep.mubr.msk.f32.mxu1 %vm2911_vm1, %v2912_v13 }
0x23ed   :  { %2642 = vmatprep.subr.bf16.mxu1 %v2910_v4  ;;  %v1767_v4 = vrot.slane %v1671_v58, 6 }
0x23f0   :  { %2644 = vmatpush3.bf16.msra.mxu1 %v3217_v5 }
0x24be   :  { %v1751_v18 = vpop.f32.mrb[14].mxu1 }
0x24bf   :  { %v1756_v63 = vrot.slane %v1751_v18, 6  ;;  %v2499_v1 = vpop.f32.mrb[15].mxu1  ;;  %v2023_v18 = vld [vmem:[%s3455_s11 + $0x10] sm:$0xff] }
0x24c1   :  { %v1758_v2 = vadd.f32 %v1756_v63, %v3253_v24 }
0x24c3   :  { %2770 = vtanh.f32 %v1758_v2  ;;  %v2218_v3 = vmul.f32 -1.442695, %v1758_v2 }
0x24c5   :  { %2772 = vpow2.f32 %v2218_v3 }
0x24cd   :  { %v2771_v8 = vpop.eup %2770 }
0x24ce   :  { %1771 = vrot.lane.b32.xlu1 %v2771_v8, %s2913_s19 }
0x24cf   :  { %v2773_v6 = vpop.eup %2772 }
0x24d0   :  { %v1762_v0 = vadd.f32 1.0, %v2773_v6 }
0x24d2   :  { %2774 = vrcp.f32 %v1762_v0 }
0x24dc   :  { %v2775_v7 = vpop.eup %2774 }
0x24dd   :  { %v1769_v5 = vmul.f32 %v2775_v7, %v1767_v4 }
0x2540   :  { %v1772_v13 = vpop.permute.xlu1 %1771 }
0x2541   :  { %v1774_v14 = vmul.f32 %v2775_v7, %v1772_v13 }
0x2543   :  { %1776 = vrot.lane.b32.xlu0 %v1774_v14, %s2914_s3 }
0x25b5   :  { %v1777_v9 = vpop.permute.xlu0 %1776 }
0x25b6   :  { %v1779_v10 = vadd.f32 %v1777_v9, %v1769_v5 }
0x25b8   :  { %2776 = vtanh.f32 %v1779_v10  ;;  %v1878_v35 = vrot.slane %v1779_v10, 6 }
0x25c2   :  { %v2777_v11 = vpop.eup %2776 }
0x25c3   :  { %1782 = vrot.lane.b32.xlu1 %v2777_v11, %s2913_s19 }
0x2635   :  { %v1783_v12 = vpop.permute.xlu1 %1782 }
0x2636   :  { %v3330_v15 = vmul.f32 %v2775_v7, %v1783_v12 }
0x2638   :  { %v1791_v16 = vrot.slane %v3330_v15, 2 }
0x263a   :  { %1792 = vrot.lane.b32.xlu0 %v1791_v16, %s2914_s3 }
0x26ac   :  { %v1793_v17 = vpop.permute.xlu0 %1792 }
0x26ad   :  { %2509 = vmatmul.mubr.msk.f32.vlgmr.msra.gmra.mrb[16].mxu0 %vm65_vm0, %v1793_v17 }
0x2780   :  { %v1862_v21 = vpop.f32.mrb[16].mxu0 }
0x2781   :  { %v1867_v22 = vrot.slane %v1862_v21, 4  ;;  %v2510_v25 = vpop.f32.mrb[17].mxu0 }
0x2783   :  { %v1869_v27 = vadd.f32 %v1867_v22, %v3253_v24 }
0x2785   :  { %2778 = vtanh.f32 %v1869_v27  ;;  %v2220_v29 = vmul.f32 -1.442695, %v1869_v27 }
0x2787   :  { %2780 = vpow2.f32 %v2220_v29 }
0x278f   :  { %v2779_v28 = vpop.eup %2778 }
0x2790   :  { %1882 = vrot.lane.b32.xlu1 %v2779_v28, %s2913_s19 }
0x2791   :  { %v2781_v30 = vpop.eup %2780 }
0x2792   :  { %v1873_v31 = vadd.f32 1.0, %v2781_v30 }
0x2794   :  { %2782 = vrcp.f32 %v1873_v31 }
0x279e   :  { %v2783_v32 = vpop.eup %2782 }
0x279f   :  { %v1880_v36 = vmul.f32 %v2783_v32, %v1878_v35 }
0x2802   :  { %v1883_v33 = vpop.permute.xlu1 %1882 }
0x2803   :  { %v1885_v34 = vmul.f32 %v2783_v32, %v1883_v33 }
0x2805   :  { %1887 = vrot.lane.b32.xlu0 %v1885_v34, %s2914_s3 }
0x2877   :  { %v1888_v37 = vpop.permute.xlu0 %1887 }
0x2878   :  { %v1890_v23 = vadd.f32 %v1888_v37, %v1880_v36 }
0x287a   :  { %2784 = vtanh.f32 %v1890_v23 }
0x2884   :  { %v2785_v38 = vpop.eup %2784 }
0x2885   :  { %1893 = vrot.lane.b32.xlu1 %v2785_v38, %s2913_s19 }
0x28f7   :  { %v1894_v40 = vpop.permute.xlu1 %1893 }
0x28f8   :  { %v1896_v26 = vmul.f32 %v2783_v32, %v1894_v40 }
0x28fa   :  { %v1902_v41 = vrot.slane %v1896_v26, 4 }
0x28fc   :  { %1903 = vrot.lane.b32.xlu0 %v1902_v41, %s2914_s3 }
0x296e   :  { %v1904_v43 = vpop.permute.xlu0 %1903 }
0x296f   :  { %2520 = vmatmul.mubr.msk.f32.vlgmr.msra.gmra.mrb[16].mxu1 %vm65_vm0, %v1904_v43 }
0x2a42   :  { %v1973_v44 = vpop.f32.mrb[16].mxu1 }
0x2a43   :  { %v1978_v45 = vrot.slane %v1973_v44, 2  ;;  %v2521_v46 = vpop.f32.mrb[17].mxu1 }
0x2a45   :  { %v1980_v47 = vadd.f32 %v1978_v45, %v3253_v24  ;;  %v1989_v24 = vrot.slane %v1890_v23, 6 }
0x2a47   :  { %2786 = vtanh.f32 %v1980_v47  ;;  %v2222_v49 = vmul.f32 -1.442695, %v1980_v47 }
0x2a49   :  { %2788 = vpow2.f32 %v2222_v49 }
0x2a51   :  { %v2787_v48 = vpop.eup %2786 }
0x2a52   :  { %1993 = vrot.lane.b32.xlu1 %v2787_v48, %s2913_s19 }
0x2a53   :  { %v2789_v50 = vpop.eup %2788 }
0x2a54   :  { %v1984_v51 = vadd.f32 1.0, %v2789_v50 }
0x2a56   :  { %2790 = vrcp.f32 %v1984_v51 }
0x2a60   :  { %v2791_v52 = vpop.eup %2790 }
0x2a61   :  { %v1991_v54 = vmul.f32 %v2791_v52, %v1989_v24 }
0x2ac4   :  { %v1994_v20 = vpop.permute.xlu1 %1993 }
0x2ac5   :  { %v1996_v53 = vmul.f32 %v2791_v52, %v1994_v20 }
0x2ac7   :  { %1998 = vrot.lane.b32.xlu0 %v1996_v53, %s2914_s3 }
0x2acb   :  { %1349 = vrot.lane.b32.xlu0 %v3274_v59, %s2914_s3 }
0x2acf   :  { %1571 = vrot.lane.b32.xlu0 %v3304_v42, %s2914_s3 }
0x2ad3   :  { %1898 = vrot.lane.b32.xlu0 %v1896_v26, %s2914_s3 }
0x2ad7   :  { %1034 = vrot.lane.b32.xlu0 %v3179_v55, %s2915_s8  ;;  %v2021_v55 = vld [vmem:[%s3455_s11] sm:$0xff] }
0x2ad8   :  { %v2645_v62 = vpack.c.bf16 %v2022_v61, %v2021_v55 }
0x2ada   :  { %2646 = vmatprep.subr.bf16.mxu0 %v2645_v62 }
0x2adb   :  { %2648 = vmatpush3.bf16.msra.mxu0 %v2645_v62 }
0x2b39   :  { %v1999_v56 = vpop.permute.xlu0 %1998 }
0x2b3a   :  { %v2001_v57 = vadd.f32 %v1999_v56, %v1991_v54 }
0x2b3c   :  { %2792 = vtanh.f32 %v2001_v57 }
0x2b3d   :  { %v1350_v58 = vpop.permute.xlu0 %1349 }
0x2b3e   :  { %1352 = vst.msk [vmem:[#allocation2] sm:$0xc] %vm368_vm3, %v1350_v58 }
0x2b41   :  { %v1572_v39 = vpop.permute.xlu0 %1571 }
0x2b42   :  { %1574 = vst.msk [vmem:[#allocation2] sm:$0xc0] %vm592_vm4, %v1572_v39 }
0x2b45   :  { %v1899_v59 = vpop.permute.xlu0 %1898 }
0x2b46   :  { %v2793_v60 = vpop.eup %2792  ;;  %1901 = vst.msk [vmem:[#allocation2 + $0x8] sm:$0x30] %vm480_vm5, %v1899_v59 }
0x2b47   :  { %2004 = vrot.lane.b32.xlu1 %v2793_v60, %s2913_s19 }
0x2b49   :  { %v1035_v42 = vpop.permute.xlu0 %1034 }
0x2b4a   :  { %1037 = vst.msk [vmem:[#allocation7 - $0x6] sm:$0xc0] %vm592_vm4, %v1035_v42 }
0x2b4b   :  { %1460 = vrot.lane.b32.xlu1 %v3289_v19, %s2914_s3  ;;  %v2024_v19 = vld [vmem:[%s3455_s11 + $0x18] sm:$0xff]  ;;  %s2916_s11 = smov [#allocation5]  }
0x2b4c   :  { %v2649_v63 = vpack.c.bf16 %v2024_v19, %v2023_v18 }
0x2b4e   :  { %2650 = vmatprep.subr.bf16.mxu0 %v2649_v63 }
0x2b4f   :  { %1787 = vrot.lane.b32.xlu1 %v3330_v15, %s2914_s3  ;;  %2652 = vmatpush3.bf16.msra.mxu0 %v2649_v63 }
0x2bb9   :  { %v2005_v1 = vpop.permute.xlu1 %2004 }
0x2bba   :  { %v2007_v2 = vmul.f32 %v2791_v52, %v2005_v1 }
0x2bbc   :  { %2009 = vrot.lane.b32.xlu1 %v2007_v2, %s2914_s3  ;;  %s2133_s3 = sshll.u32 %s2916_s11, 4  ;;  %s2134_s3 = int_to_ptr.vmem [resolvable:$true] %s2133_s3 }
0x2bbd   :  { %v1461_v8 = vpop.permute.xlu1 %1460  ;;  %s2794_s26 = scalar_lea.vmem %s2134_s3, 32  ;;  %p2799_p1 = scmp.lt.s32.totalorder %s2134_s3, %s2134_s3 }
0x2bbe   :  { %1463 = vst.msk [vmem:[#allocation2] sm:$0x30] %vm480_vm5, %v1461_v8  ;;  %p2795_p0 = scmp.ne.s32.totalorder %s2134_s3, %s2794_s26  ;;  %p2800_p2 = scmp.lt.s32.totalorder %s2794_s26, %s2794_s26 }
0x2bc0   :  { %2015 = vrot.lane.b32.xlu1 %v2001_v57, %s2915_s8  ;;  %p2801_p3 = por %p2800_p2, %p2799_p1 }
0x2bc1   :  { %v1788_v3 = vpop.permute.xlu1 %1787 }
0x2bc2   :  { %1790 = vst.msk [vmem:[#allocation2 + $0x8] sm:$0xc] %vm368_vm3, %v1788_v3  ;;  %p2802_p4 = pnand %p2801_p3, %p2795_p0 }
0x2bc5   :  { %v2019_v6 = vld [vmem:[#allocation2] sm:$0xff] }
0x2bc6   :  { %2530 = vmatprep.mubr.msk.f32.mxu0 %vm65_vm0, %v2019_v6 }
0x2c2e   :  { %v2010_v0 = vpop.permute.xlu1 %2009 }
0x2c2f   :  { %2012 = vst.msk [vmem:[#allocation2 + $0x8] sm:$0xc0] %vm592_vm4, %v2010_v0  ;;  %2013 = vst.msk [vmem:[#allocation8 - $0x6] sm:$0xc0] %vm592_vm4, %v2010_v0 }
0x2c32   :  { %v2016_v7 = vpop.permute.xlu1 %2015 }
0x2c33   :  { %2018 = vst.msk [vmem:[#allocation10 - $0x6] sm:$0xc0] %vm592_vm4, %v2016_v7 }
0x2c36   :  { %v2020_v13 = vld [vmem:[#allocation2 + $0x8] sm:$0xff] }
0x2c37   :  { %2531 = vmatmul.mubr.msk.f32.vlgmr.msra.gmra.mrb[18].mxu0 %vm65_vm0, %v2020_v13 }
0x2c38   :  { %2805 = shalt.err (!%p2802_p4)
}
0x2c39   :  { %s2806_s4 = scalar_lea.hbm %s3458_s14, 32 }
0x2c3a   :  { %p2807_p5 = scmp.ne.s32.totalorder %s3458_s14, %s2806_s4  ;;  %p2810_p6 = scmp.lt.u32.totalorder %s2806_s4, %s3458_s14 }
0x2c3c   :  { %p2812_p7 = pnand %p2810_p6, %p2807_p5 }
0x2c3e   :  { %2815 = shalt.err (!%p2812_p7)
}
0x2c3f   :  { %2136 = dma.vmem_to_hbm [thread:$0]  %s2134_s3, 32, %s3458_s14, [#allocation6]  }
0x2c40   :  { %s2816_s9 = scalar_lea.vmem %s2154_s2, 32  ;;  %p2821_p9 = scmp.lt.s32.totalorder %s2154_s2, %s2154_s2 }
0x2c41   :  { %p2817_p8 = scmp.ne.s32.totalorder %s2154_s2, %s2816_s9  ;;  %p2822_p10 = scmp.lt.s32.totalorder %s2816_s9, %s2816_s9 }
0x2c43   :  { %p2823_p11 = por %p2822_p10, %p2821_p9 }
0x2c45   :  { %p2824_p12 = pnand %p2823_p11, %p2817_p8 }
0x2c47   :  { %2827 = shalt.err (!%p2824_p12)
}
0x2c48   :  { %s2828_s21 = scalar_lea.hbm %s3460_s16, 32 }
0x2c49   :  { %p2829_p13 = scmp.ne.s32.totalorder %s3460_s16, %s2828_s21  ;;  %p2832_p0 = scmp.lt.u32.totalorder %s2828_s21, %s3460_s16 }
0x2c4b   :  { %p2834_p1 = pnand %p2832_p0, %p2829_p13 }
0x2c4d   :  { %2837 = shalt.err (!%p2834_p1)
}
0x2c4e   :  { %2156 = dma.vmem_to_hbm [thread:$0]  %s2154_s2, 32, %s3460_s16, [#allocation9]  }
0x2c4f   :  { %s2918_s27 = smov [#allocation7]   ;;  %s2919_s11 = smov [#allocation10]  }
0x2c50   :  { %s2143_s28 = sshll.u32 %s2918_s27, 4  ;;  %s2163_s3 = sshll.u32 %s2919_s11, 4  ;;  %s2144_s28 = int_to_ptr.vmem [resolvable:$true] %s2143_s28  ;;  %s2164_s3 = int_to_ptr.vmem [resolvable:$true] %s2163_s3 }
0x2c51   :  { %s2838_s29 = scalar_lea.vmem %s2144_s28, 32  ;;  %p2843_p3 = scmp.lt.s32.totalorder %s2144_s28, %s2144_s28 }
0x2c52   :  { %p2839_p2 = scmp.ne.s32.totalorder %s2144_s28, %s2838_s29  ;;  %p2844_p4 = scmp.lt.s32.totalorder %s2838_s29, %s2838_s29 }
0x2c54   :  { %p2845_p5 = por %p2844_p4, %p2843_p3 }
0x2c56   :  { %p2846_p6 = pnand %p2845_p5, %p2839_p2 }
0x2c58   :  { %2849 = shalt.err (!%p2846_p6)
}
0x2c59   :  { %s2850_s30 = scalar_lea.hbm %s3459_s15, 32 }
0x2c5a   :  { %p2851_p7 = scmp.ne.s32.totalorder %s3459_s15, %s2850_s30  ;;  %p2854_p8 = scmp.lt.u32.totalorder %s2850_s30, %s3459_s15 }
0x2c5c   :  { %p2856_p9 = pnand %p2854_p8, %p2851_p7 }
0x2c5e   :  { %2859 = shalt.err (!%p2856_p9)
}
0x2c5f   :  { %2146 = dma.vmem_to_hbm [thread:$0]  %s2144_s28, 32, %s3459_s15, [#allocation6]  }
0x2c60   :  { %s2860_s20 = scalar_lea.vmem %s2164_s3, 32  ;;  %p2865_p11 = scmp.lt.s32.totalorder %s2164_s3, %s2164_s3 }
0x2c61   :  { %p2861_p10 = scmp.ne.s32.totalorder %s2164_s3, %s2860_s20  ;;  %p2866_p12 = scmp.lt.s32.totalorder %s2860_s20, %s2860_s20 }
0x2c63   :  { %p2867_p13 = por %p2866_p12, %p2865_p11 }
0x2c65   :  { %p2868_p0 = pnand %p2867_p13, %p2861_p10 }
0x2c67   :  { %2871 = shalt.err (!%p2868_p0)
}
0x2c68   :  { %s2872_s9 = scalar_lea.hbm %s3461_s17, 32 }
0x2c69   :  { %p2873_p1 = scmp.ne.s32.totalorder %s3461_s17, %s2872_s9  ;;  %p2876_p2 = scmp.lt.u32.totalorder %s2872_s9, %s3461_s17 }
0x2c6b   :  { %p2878_p3 = pnand %p2876_p2, %p2873_p1 }
0x2c6d   :  { %2881 = shalt.err (!%p2878_p3)
}
0x2c6e   :  { %2166 = dma.vmem_to_hbm [thread:$0]  %s2164_s3, 32, %s3461_s17, [#allocation9]   ;;  %v2223_v14 = vld [vmem:[%s3456_s12] ss:$0 sm:$0xff] }
0x2c6f   :  { %s2920_s14 = smov [#allocation3]  }
0x2c70   :  { %s2120_s25 = sshll.u32 %s2920_s14, 4  ;;  %s2121_s25 = int_to_ptr.vmem [resolvable:$true] %s2120_s25 }
0x2c71   :  { %s2882_s27 = scalar_lea.vmem %s2121_s25, 256  ;;  %p2887_p5 = scmp.lt.s32.totalorder %s2121_s25, %s2121_s25 }
0x2c72   :  { %p2883_p4 = scmp.ne.s32.totalorder %s2121_s25, %s2882_s27  ;;  %p2888_p6 = scmp.lt.s32.totalorder %s2882_s27, %s2882_s27 }
0x2c74   :  { %p2889_p7 = por %p2888_p6, %p2887_p5 }
0x2c76   :  { %p2890_p8 = pnand %p2889_p7, %p2883_p4 }
0x2d0a   :  { %v2532_v4 = vpop.f32.mrb[18].mxu0 }
0x2d0b   :  { %v2110_v5 = vadd.f32 %v2532_v4, %v2223_v14  ;;  %v2104_v9 = vpop.f32.mrb[19].mxu0 }
0x2d0c   :  { %v2105_v10 = vadd.f32 %v2223_v14, %v2104_v9 }
0x2d0d   :  { %2114 = vst [vmem:[#allocation3 + $0x8] sm:$0xff] %v2110_v5 }
0x2d0e   :  { %2113 = vst [vmem:[#allocation3] sm:$0xff] %v2105_v10 }
0x2d0f   :  { %2893 = shalt.err (!%p2890_p8)
}
0x2d10   :  { %s2894_s12 = scalar_lea.hbm %s3457_s13, 256 }
0x2d11   :  { %p2895_p9 = scmp.ne.s32.totalorder %s3457_s13, %s2894_s12  ;;  %p2898_p10 = scmp.lt.u32.totalorder %s2894_s12, %s3457_s13 }
0x2d13   :  { %p2900_p11 = pnand %p2898_p10, %p2895_p9 }
0x2d15   :  { %2903 = shalt.err (!%p2900_p11)
}
0x2d16   :  { %s2921_s0 = smov 128   ;;  %s2922_s30 = smov 8  }
0x2d17   :  { %2126 = dma.vmem_to_hbm [thread:$0]  %s2121_s25, 256, %s3457_s13, [#allocation4], %s2921_s0, %s2921_s0, %s2922_s30  }
0x2d18   :  { %2904 = dma.done.wait [#allocation4], 256  }
0x2d19   :  { %2905 = vsyncadd [#allocation4], 4294967040 }
0x2d1a   :  { %2906 = dma.done.wait [#allocation6], 64  }
0x2d1b   :  { %2907 = vsyncadd [#allocation6], 4294967232 }
0x2d1c   :  { %2908 = dma.done.wait [#allocation9], 64  }
0x2d1d   :  { %2909 = vsyncadd [#allocation9], 4294967232 }
0x2d1e   :  { %2182 = vsyncpa [#allocation4], 1 }
0x2d1f   :  { %2183 = vsyncpa [#allocation6], 1 }
0x2d20   :  { %2184 = vsyncpa [#allocation9], 1 }

</bundles_post_ra>
